<compile_context>
chip_gen: v6e
topology: v6e:2x2x1
jax: 0.10.0
libtpu: 0.0.40
codegen_flags: <defaults>
</compile_context>

<pallas_src>
import jax
import jax.numpy as jnp
from jax import lax
from jax.experimental import pallas as pl
from jax.experimental.pallas import tpu as pltpu

EPS = 1e-5
KS = 3
NHIDDEN = 128


def spade_kernel(x_ref, seg_ref, w1_ref, b1_ref, wgb_ref, bg_ref, bb_ref,
                 out_ref, actv_pad_ref):
    # x_ref:   (1, Cn, H*W)  f32   input features, channel-major (lane-dense in H*W)
    # seg_ref: (1, H*W, 9*Cl) bf16 im2col'd nearest-resized segmap
    # w1_ref:  (9*Cl, NH) bf16     b1_ref: (1, NH) f32
    # wgb_ref: (9, NH, Np) bf16    fused [gamma | beta] conv weights, Np = roundup(2*Cn, 128)
    # bg_ref:  (Cn, 1) f32         bb_ref: (Cn, 1) f32
    # out_ref: (1, Cn, H*W)
    # actv_pad_ref: VMEM scratch (H+2, W+2, NH) f32, zero-padded activations.
    Cn = x_ref.shape[1]
    HW = x_ref.shape[2]
    NH = w1_ref.shape[1]
    H = actv_pad_ref.shape[0] - 2
    W = actv_pad_ref.shape[1] - 2
    Np = wgb_ref.shape[2]

    # ---- param-free instance norm stats: one pass, (Cn, 1) vectors only ----
    x = x_ref[0].astype(jnp.float32)                           # (Cn, HW)
    s1 = jnp.sum(x, axis=1, keepdims=True)
    s2 = jnp.sum(x * x, axis=1, keepdims=True)
    mean = s1 * (1.0 / HW)
    var = s2 * (1.0 / HW) - mean * mean
    inv_std = lax.rsqrt(var + EPS)                             # (Cn, 1)

    # ---- mlp_shared: all 9 taps folded into K -> single bf16 matmul + ReLU ----
    actv = jnp.dot(seg_ref[0], w1_ref[...],
                   preferred_element_type=jnp.float32)         # (HW, NH) f32
    actv = jnp.maximum(actv + b1_ref[...], 0.0)

    # Stage activations in the persistent zero-padded scratch. Interior is fully
    # overwritten every grid step; only the 1-pixel border needs (re)zeroing
    # (kept per-step so it stays correct under megacore splitting of the grid).
    actv_pad_ref[0:1, :, :] = jnp.zeros((1, W + 2, NH), jnp.float32)
    actv_pad_ref[H + 1:H + 2, :, :] = jnp.zeros((1, W + 2, NH), jnp.float32)
    actv_pad_ref[:, 0:1, :] = jnp.zeros((H + 2, 1, NH), jnp.float32)
    actv_pad_ref[:, W + 1:W + 2, :] = jnp.zeros((H + 2, 1, NH), jnp.float32)
    actv_pad_ref[1:1 + H, 1:1 + W, :] = actv.reshape(H, W, NH)

    # ---- fused mlp_gamma || mlp_beta 3x3 conv: 9 bf16 matmuls, fp32 accumulate ----
    acc = jnp.zeros((HW, Np), jnp.float32)
    for dy in range(KS):
        for dx in range(KS):
            patch = actv_pad_ref[dy:dy + H, dx:dx + W, :].reshape(HW, NH)
            acc = acc + jnp.dot(patch.astype(jnp.bfloat16),
                                wgb_ref[dy * KS + dx],
                                preferred_element_type=jnp.float32)

    # One well-shaped transpose (HW, Np)->(Np, HW) so the epilogue is channel-major
    # and therefore lane-dense even for small Cn.
    gb_t = jnp.transpose(acc)                                  # (Np, HW)
    gamma = gb_t[0:Cn, :] + bg_ref[...]                        # (Cn, HW)
    beta = gb_t[Cn:2 * Cn, :] + bb_ref[...]                    # (Cn, HW)

    # out = instance_norm(x) * (1 + gamma) + beta, fused (no `normalized` tensor).
    out = (x - mean) * (inv_std * (1.0 + gamma)) + beta        # (Cn, HW)
    out_ref[0] = out.astype(out_ref.dtype)


def _round_up(v, m):
    return ((v + m - 1) // m) * m


@jax.jit
def spade_forward(x_nchw, segmap_nchw, params):
    """SPADE forward. x_nchw: (N, norm_nc, H, W); segmap_nchw: (N, label_nc, Hs, Ws)."""
    N, Cn, H, W = x_nchw.shape
    _, Cl, Hs, Ws = segmap_nchw.shape
    NH = params["b1"].shape[0]
    HW = H * W
    Np = _round_up(2 * Cn, 128)
    # Lane-dense layout + in-kernel transpose assume H*W is a multiple of 128
    # (true for typical SPADE resolutions).
    assert HW % 128 == 0, "H*W must be a multiple of 128 for this kernel"

    # x / out stay channel-major: (N, Cn, H*W) is a free reshape of NCHW.
    x = x_nchw.reshape(N, Cn, HW)

    # F.interpolate(segmap, size=(H, W), mode='nearest') + im2col — pure index glue.
    seg = jnp.transpose(segmap_nchw, (0, 2, 3, 1))             # (N, Hs, Ws, Cl)
    rows = (jnp.arange(H) * Hs) // H
    cols = (jnp.arange(W) * Ws) // W
    seg = seg[:, rows][:, :, cols]                             # (N, H, W, Cl)
    seg_pad = jnp.pad(seg, ((0, 0), (1, 1), (1, 1), (0, 0)))
    taps = [seg_pad[:, dy:dy + H, dx:dx + W, :]
            for dy in range(KS) for dx in range(KS)]
    seg_i2c = jnp.concatenate(taps, axis=-1)                   # (N, H, W, 9*Cl)
    seg_i2c = seg_i2c.reshape(N, HW, KS * KS * Cl).astype(jnp.bfloat16)

    # Weight prep: bf16 MXU operands; gamma/beta convs fused along output channels,
    # output dim zero-padded to a multiple of 128 lanes.
    w1 = params["w1"].reshape(KS * KS * Cl, NH).astype(jnp.bfloat16)
    b1 = params["b1"].reshape(1, NH).astype(jnp.float32)
    wgb = jnp.concatenate([params["wg"], params["wb"]], axis=-1)     # (3,3,NH,2*Cn)
    wgb = wgb.reshape(KS * KS, NH, 2 * Cn)
    wgb = jnp.pad(wgb, ((0, 0), (0, 0), (0, Np - 2 * Cn))).astype(jnp.bfloat16)
    bg = params["bg"].reshape(Cn, 1).astype(jnp.float32)
    bb = params["bb"].reshape(Cn, 1).astype(jnp.float32)

    out = pl.pallas_call(
        spade_kernel,
        out_shape=jax.ShapeDtypeStruct((N, Cn, HW), x_nchw.dtype),
        grid_spec=pltpu.PrefetchScalarGridSpec(
            num_scalar_prefetch=0,
            grid=(N,),
            in_specs=[
                pl.BlockSpec((1, Cn, HW), lambda n: (n, 0, 0)),
                pl.BlockSpec((1, HW, KS * KS * Cl), lambda n: (n, 0, 0)),
                # TODO(synk): mark the constant weight/bias specs single-buffered
                # (pipeline_mode=pl.Buffered(1)) to save weight VMEM at large norm_nc.
                pl.BlockSpec((KS * KS * Cl, NH), lambda n: (0, 0)),
                pl.BlockSpec((1, NH), lambda n: (0, 0)),
                pl.BlockSpec((KS * KS, NH, Np), lambda n: (0, 0, 0)),
                pl.BlockSpec((Cn, 1), lambda n: (0, 0)),
                pl.BlockSpec((Cn, 1), lambda n: (0, 0)),
            ],
            out_specs=pl.BlockSpec((1, Cn, HW), lambda n: (n, 0, 0)),
            scratch_shapes=[pltpu.VMEM((H + 2, W + 2, NH), jnp.float32)],
        ),
        compiler_params=pltpu.CompilerParams(
            dimension_semantics=("parallel",),
            vmem_limit_bytes=48 * 1024 * 1024,
        ),
    )(x, seg_i2c, w1, b1, wgb, bg, bb)

    return out.reshape(N, Cn, H, W)


def spade_reference(x_nchw, segmap_nchw, params):
    """Pure-JAX reference (mirrors the PyTorch forward) for validation."""
    N, Cn, H, W = x_nchw.shape
    _, Cl, Hs, Ws = segmap_nchw.shape
    x = jnp.transpose(x_nchw, (0, 2, 3, 1)).astype(jnp.float32)
    seg = jnp.transpose(segmap_nchw, (0, 2, 3, 1)).astype(jnp.float32)
    rows = (jnp.arange(H) * Hs) // H
    cols = (jnp.arange(W) * Ws) // W
    seg = seg[:, rows][:, :, cols]

    mean = jnp.mean(x, axis=(1, 2), keepdims=True)
    var = jnp.mean((x - mean) ** 2, axis=(1, 2), keepdims=True)
    normalized = (x - mean) / jnp.sqrt(var + EPS)

    dn = ("NHWC", "HWIO", "NHWC")
    hp = lax.Precision.HIGHEST
    actv = lax.conv_general_dilated(seg, params["w1"], (1, 1), "SAME",
                                    dimension_numbers=dn, precision=hp) + params["b1"]
    actv = jnp.maximum(actv, 0.0)
    gamma = lax.conv_general_dilated(actv, params["wg"], (1, 1), "SAME",
                                     dimension_numbers=dn, precision=hp) + params["bg"]
    beta = lax.conv_general_dilated(actv, params["wb"], (1, 1), "SAME",
                                    dimension_numbers=dn, precision=hp) + params["bb"]
    out = normalized * (1 + gamma) + beta
    return jnp.transpose(out, (0, 3, 1, 2))


if __name__ == "__main__":
    N, norm_nc, label_nc = 2, 4, 4
    H = W = 16
    Hs = Ws = 8          # segmap at lower resolution -> exercises nearest resize

    key = jax.random.PRNGKey(0)
    kx, ks, k0, k1, k2, k3, k4, k5 = jax.random.split(key, 8)

    x = jax.random.normal(kx, (N, norm_nc, H, W), jnp.float32)
    segmap = jax.random.normal(ks, (N, label_nc, Hs, Ws), jnp.float32)

    # Deterministic synthetic parameters (HWIO conv weights).
    params = {
        "w1": 0.05 * jax.random.normal(k0, (KS, KS, label_nc, NHIDDEN), jnp.float32),
        "b1": 0.05 * jax.random.normal(k1, (NHIDDEN,), jnp.float32),
        "wg": 0.05 * jax.random.normal(k2, (KS, KS, NHIDDEN, norm_nc), jnp.float32),
        "bg": 0.05 * jax.random.normal(k3, (norm_nc,), jnp.float32),
        "wb": 0.05 * jax.random.normal(k4, (KS, KS, NHIDDEN, norm_nc), jnp.float32),
        "bb": 0.05 * jax.random.normal(k5, (norm_nc,), jnp.float32),
    }

    out = jax.block_until_ready(spade_forward(x, segmap, params))
    ref = jax.block_until_ready(spade_reference(x, segmap, params))

    assert out.shape == (N, norm_nc, H, W)
    assert bool(jnp.all(jnp.isfinite(out)))
    # bf16 MXU operands (fp32 accumulation) vs fp32 HIGHEST-precision reference.
    assert bool(jnp.allclose(out, ref, rtol=2e-2, atol=3e-2)), \
        f"max abs diff = {float(jnp.max(jnp.abs(out - ref)))}"
    print("KERNEL_OK")
</pallas_src>

<mosaic_0001>
module attributes {stable_mosaic.version = 11 : i64} {
  func.func @spade_kernel(%arg0: i32, %arg1: memref<1x4x256xf32, #tpu.memory_space<vmem>>, %arg2: memref<1x256x36xbf16, #tpu.memory_space<vmem>>, %arg3: memref<36x128xbf16, #tpu.memory_space<vmem>>, %arg4: memref<1x128xf32, #tpu.memory_space<vmem>>, %arg5: memref<9x128x128xbf16, #tpu.memory_space<vmem>>, %arg6: memref<4x1xf32, #tpu.memory_space<vmem>>, %arg7: memref<4x1xf32, #tpu.memory_space<vmem>>, %arg8: memref<1x4x256xf32, #tpu.memory_space<vmem>>, %arg9: memref<18x18x128xf32, #tpu.memory_space<vmem>>) attributes {dimension_semantics = [#tpu.dimension_semantics<parallel>], iteration_bounds = array<i64: 2>, scalar_prefetch = 0 : i64, scratch_operands = 1 : i64, tpu.core_type = #tpu.core_type<tc>, window_params = [{transform_indices = @transform_0, window_bounds = array<i64: 1, 4, 256>}, {transform_indices = @transform_1, window_bounds = array<i64: 1, 256, 36>}, {pipeline_mode = #tpu.pipeline_mode<synchronous>, transform_indices = @transform_2, window_bounds = array<i64: 36, 128>}, {pipeline_mode = #tpu.pipeline_mode<synchronous>, transform_indices = @transform_3, window_bounds = array<i64: 1, 128>}, {pipeline_mode = #tpu.pipeline_mode<synchronous>, transform_indices = @transform_4, window_bounds = array<i64: 9, 128, 128>}, {pipeline_mode = #tpu.pipeline_mode<synchronous>, transform_indices = @transform_5, window_bounds = array<i64: 4, 1>}, {pipeline_mode = #tpu.pipeline_mode<synchronous>, transform_indices = @transform_6, window_bounds = array<i64: 4, 1>}, {transform_indices = @transform_7, window_bounds = array<i64: 1, 4, 256>}]} {
    %c0 = arith.constant 0 : index
    %c0_0 = arith.constant 0 : index
    %c0_1 = arith.constant 0 : index
    %0 = vector.load %arg1[%c0, %c0_0, %c0_1] : memref<1x4x256xf32, #tpu.memory_space<vmem>>, vector<1x4x256xf32>
    %1 = vector.shape_cast %0 : vector<1x4x256xf32> to vector<4x256xf32>
    %cst = arith.constant dense<0.000000e+00> : vector<4xf32>
    %2 = vector.multi_reduction <add>, %1, %cst [1] : vector<4x256xf32> to vector<4xf32>
    %3 = vector.shape_cast %2 : vector<4xf32> to vector<4x1xf32>
    %4 = arith.mulf %1, %1 : vector<4x256xf32>
    %cst_2 = arith.constant dense<0.000000e+00> : vector<4xf32>
    %5 = vector.multi_reduction <add>, %4, %cst_2 [1] : vector<4x256xf32> to vector<4xf32>
    %6 = vector.shape_cast %5 : vector<4xf32> to vector<4x1xf32>
    %cst_3 = arith.constant 3.906250e-03 : f32
    %7 = vector.broadcast %cst_3 : f32 to vector<4x1xf32>
    %8 = arith.mulf %3, %7 : vector<4x1xf32>
    %cst_4 = arith.constant 3.906250e-03 : f32
    %9 = vector.broadcast %cst_4 : f32 to vector<4x1xf32>
    %10 = arith.mulf %6, %9 : vector<4x1xf32>
    %11 = arith.mulf %8, %8 : vector<4x1xf32>
    %12 = arith.subf %10, %11 : vector<4x1xf32>
    %cst_5 = arith.constant 9.99999974E-6 : f32
    %13 = vector.broadcast %cst_5 : f32 to vector<4x1xf32>
    %14 = arith.addf %12, %13 : vector<4x1xf32>
    %15 = math.rsqrt %14 : vector<4x1xf32>
    %c0_6 = arith.constant 0 : index
    %c0_7 = arith.constant 0 : index
    %c0_8 = arith.constant 0 : index
    %16 = vector.load %arg2[%c0_6, %c0_7, %c0_8] : memref<1x256x36xbf16, #tpu.memory_space<vmem>>, vector<1x256x36xbf16>
    %17 = vector.shape_cast %16 : vector<1x256x36xbf16> to vector<256x36xbf16>
    %c0_9 = arith.constant 0 : index
    %c0_10 = arith.constant 0 : index
    %18 = vector.load %arg3[%c0_9, %c0_10] : memref<36x128xbf16, #tpu.memory_space<vmem>>, vector<36x128xbf16>
    %cst_11 = arith.constant dense<0.000000e+00> : vector<256x128xf32>
    %19 = tpu.matmul %17, %18, %cst_11 {dimension_numbers = #tpu.dot_dimension_numbers<[1], [0], [0], [1], [0, 0, 1, 1], [], []>} : vector<256x36xbf16>, vector<36x128xbf16>, vector<256x128xf32> -> vector<256x128xf32>
    %c0_12 = arith.constant 0 : index
    %c0_13 = arith.constant 0 : index
    %20 = vector.load %arg4[%c0_12, %c0_13] : memref<1x128xf32, #tpu.memory_space<vmem>>, vector<1x128xf32>
    %21 = vector.broadcast %20 : vector<1x128xf32> to vector<256x128xf32>
    %22 = arith.addf %19, %21 : vector<256x128xf32>
    %cst_14 = arith.constant 0.000000e+00 : f32
    %23 = vector.broadcast %cst_14 : f32 to vector<256x128xf32>
    %24 = arith.maximumf %22, %23 : vector<256x128xf32>
    %cst_15 = arith.constant 0.000000e+00 : f32
    %25 = vector.broadcast %cst_15 : f32 to vector<1x18x128xf32>
    %c0_16 = arith.constant 0 : index
    %c0_17 = arith.constant 0 : index
    %c0_18 = arith.constant 0 : index
    %26 = vector.load %arg9[%c0_16, %c0_17, %c0_18] : memref<18x18x128xf32, #tpu.memory_space<vmem>>, vector<1x18x128xf32>
    tpu.vector_store %arg9[%c0_16, %c0_17, %c0_18], %25 {strides = array<i32>} : memref<18x18x128xf32, #tpu.memory_space<vmem>>, vector<1x18x128xf32>,
    %cst_19 = arith.constant 0.000000e+00 : f32
    %27 = vector.broadcast %cst_19 : f32 to vector<1x18x128xf32>
    %c17 = arith.constant 17 : index
    %c0_20 = arith.constant 0 : index
    %c0_21 = arith.constant 0 : index
    %28 = vector.load %arg9[%c17, %c0_20, %c0_21] : memref<18x18x128xf32, #tpu.memory_space<vmem>>, vector<1x18x128xf32>
    tpu.vector_store %arg9[%c17, %c0_20, %c0_21], %27 {strides = array<i32>} : memref<18x18x128xf32, #tpu.memory_space<vmem>>, vector<1x18x128xf32>,
    %cst_22 = arith.constant 0.000000e+00 : f32
    %29 = vector.broadcast %cst_22 : f32 to vector<18x1x128xf32>
    %c0_23 = arith.constant 0 : index
    %c0_24 = arith.constant 0 : index
    %c0_25 = arith.constant 0 : index
    %30 = vector.load %arg9[%c0_23, %c0_24, %c0_25] : memref<18x18x128xf32, #tpu.memory_space<vmem>>, vector<18x1x128xf32>
    tpu.vector_store %arg9[%c0_23, %c0_24, %c0_25], %29 {strides = array<i32>} : memref<18x18x128xf32, #tpu.memory_space<vmem>>, vector<18x1x128xf32>,
    %cst_26 = arith.constant 0.000000e+00 : f32
    %31 = vector.broadcast %cst_26 : f32 to vector<18x1x128xf32>
    %c0_27 = arith.constant 0 : index
    %c17_28 = arith.constant 17 : index
    %c0_29 = arith.constant 0 : index
    %32 = vector.load %arg9[%c0_27, %c17_28, %c0_29] : memref<18x18x128xf32, #tpu.memory_space<vmem>>, vector<18x1x128xf32>
    tpu.vector_store %arg9[%c0_27, %c17_28, %c0_29], %31 {strides = array<i32>} : memref<18x18x128xf32, #tpu.memory_space<vmem>>, vector<18x1x128xf32>,
    %33 = vector.shape_cast %24 : vector<256x128xf32> to vector<16x16x128xf32>
    %c1 = arith.constant 1 : index
    %c1_30 = arith.constant 1 : index
    %c0_31 = arith.constant 0 : index
    %34 = vector.load %arg9[%c1, %c1_30, %c0_31] : memref<18x18x128xf32, #tpu.memory_space<vmem>>, vector<16x16x128xf32>
    tpu.vector_store %arg9[%c1, %c1_30, %c0_31], %33 {strides = array<i32>} : memref<18x18x128xf32, #tpu.memory_space<vmem>>, vector<16x16x128xf32>,
    %cst_32 = arith.constant 0.000000e+00 : f32
    %35 = vector.broadcast %cst_32 : f32 to vector<256x128xf32>
    %c0_33 = arith.constant 0 : index
    %c0_34 = arith.constant 0 : index
    %c0_35 = arith.constant 0 : index
    %36 = vector.load %arg9[%c0_33, %c0_34, %c0_35] : memref<18x18x128xf32, #tpu.memory_space<vmem>>, vector<16x16x128xf32>
    %37 = vector.shape_cast %36 : vector<16x16x128xf32> to vector<256x128xf32>
    %38 = arith.truncf %37 : vector<256x128xf32> to vector<256x128xbf16>
    %c0_36 = arith.constant 0 : index
    %c0_37 = arith.constant 0 : index
    %c0_38 = arith.constant 0 : index
    %39 = vector.load %arg5[%c0_36, %c0_37, %c0_38] : memref<9x128x128xbf16, #tpu.memory_space<vmem>>, vector<1x128x128xbf16>
    %40 = vector.shape_cast %39 : vector<1x128x128xbf16> to vector<128x128xbf16>
    %cst_39 = arith.constant dense<0.000000e+00> : vector<256x128xf32>
    %41 = tpu.matmul %38, %40, %cst_39 {dimension_numbers = #tpu.dot_dimension_numbers<[1], [0], [0], [1], [0, 0, 1, 1], [], []>} : vector<256x128xbf16>, vector<128x128xbf16>, vector<256x128xf32> -> vector<256x128xf32>
    %42 = arith.addf %35, %41 : vector<256x128xf32>
    %c0_40 = arith.constant 0 : index
    %c1_41 = arith.constant 1 : index
    %c0_42 = arith.constant 0 : index
    %43 = vector.load %arg9[%c0_40, %c1_41, %c0_42] : memref<18x18x128xf32, #tpu.memory_space<vmem>>, vector<16x16x128xf32>
    %44 = vector.shape_cast %43 : vector<16x16x128xf32> to vector<256x128xf32>
    %45 = arith.truncf %44 : vector<256x128xf32> to vector<256x128xbf16>
    %c1_43 = arith.constant 1 : index
    %c0_44 = arith.constant 0 : index
    %c0_45 = arith.constant 0 : index
    %46 = vector.load %arg5[%c1_43, %c0_44, %c0_45] : memref<9x128x128xbf16, #tpu.memory_space<vmem>>, vector<1x128x128xbf16>
    %47 = vector.shape_cast %46 : vector<1x128x128xbf16> to vector<128x128xbf16>
    %cst_46 = arith.constant dense<0.000000e+00> : vector<256x128xf32>
    %48 = tpu.matmul %45, %47, %cst_46 {dimension_numbers = #tpu.dot_dimension_numbers<[1], [0], [0], [1], [0, 0, 1, 1], [], []>} : vector<256x128xbf16>, vector<128x128xbf16>, vector<256x128xf32> -> vector<256x128xf32>
    %49 = arith.addf %42, %48 : vector<256x128xf32>
    %c0_47 = arith.constant 0 : index
    %c2 = arith.constant 2 : index
    %c0_48 = arith.constant 0 : index
    %50 = vector.load %arg9[%c0_47, %c2, %c0_48] : memref<18x18x128xf32, #tpu.memory_space<vmem>>, vector<16x16x128xf32>
    %51 = vector.shape_cast %50 : vector<16x16x128xf32> to vector<256x128xf32>
    %52 = arith.truncf %51 : vector<256x128xf32> to vector<256x128xbf16>
    %c2_49 = arith.constant 2 : index
    %c0_50 = arith.constant 0 : index
    %c0_51 = arith.constant 0 : index
    %53 = vector.load %arg5[%c2_49, %c0_50, %c0_51] : memref<9x128x128xbf16, #tpu.memory_space<vmem>>, vector<1x128x128xbf16>
    %54 = vector.shape_cast %53 : vector<1x128x128xbf16> to vector<128x128xbf16>
    %cst_52 = arith.constant dense<0.000000e+00> : vector<256x128xf32>
    %55 = tpu.matmul %52, %54, %cst_52 {dimension_numbers = #tpu.dot_dimension_numbers<[1], [0], [0], [1], [0, 0, 1, 1], [], []>} : vector<256x128xbf16>, vector<128x128xbf16>, vector<256x128xf32> -> vector<256x128xf32>
    %56 = arith.addf %49, %55 : vector<256x128xf32>
    %c1_53 = arith.constant 1 : index
    %c0_54 = arith.constant 0 : index
    %c0_55 = arith.constant 0 : index
    %57 = vector.load %arg9[%c1_53, %c0_54, %c0_55] : memref<18x18x128xf32, #tpu.memory_space<vmem>>, vector<16x16x128xf32>
    %58 = vector.shape_cast %57 : vector<16x16x128xf32> to vector<256x128xf32>
    %59 = arith.truncf %58 : vector<256x128xf32> to vector<256x128xbf16>
    %c3 = arith.constant 3 : index
    %c0_56 = arith.constant 0 : index
    %c0_57 = arith.constant 0 : index
    %60 = vector.load %arg5[%c3, %c0_56, %c0_57] : memref<9x128x128xbf16, #tpu.memory_space<vmem>>, vector<1x128x128xbf16>
    %61 = vector.shape_cast %60 : vector<1x128x128xbf16> to vector<128x128xbf16>
    %cst_58 = arith.constant dense<0.000000e+00> : vector<256x128xf32>
    %62 = tpu.matmul %59, %61, %cst_58 {dimension_numbers = #tpu.dot_dimension_numbers<[1], [0], [0], [1], [0, 0, 1, 1], [], []>} : vector<256x128xbf16>, vector<128x128xbf16>, vector<256x128xf32> -> vector<256x128xf32>
    %63 = arith.addf %56, %62 : vector<256x128xf32>
    %c1_59 = arith.constant 1 : index
    %c1_60 = arith.constant 1 : index
    %c0_61 = arith.constant 0 : index
    %64 = vector.load %arg9[%c1_59, %c1_60, %c0_61] : memref<18x18x128xf32, #tpu.memory_space<vmem>>, vector<16x16x128xf32>
    %65 = vector.shape_cast %64 : vector<16x16x128xf32> to vector<256x128xf32>
    %66 = arith.truncf %65 : vector<256x128xf32> to vector<256x128xbf16>
    %c4 = arith.constant 4 : index
    %c0_62 = arith.constant 0 : index
    %c0_63 = arith.constant 0 : index
    %67 = vector.load %arg5[%c4, %c0_62, %c0_63] : memref<9x128x128xbf16, #tpu.memory_space<vmem>>, vector<1x128x128xbf16>
    %68 = vector.shape_cast %67 : vector<1x128x128xbf16> to vector<128x128xbf16>
    %cst_64 = arith.constant dense<0.000000e+00> : vector<256x128xf32>
    %69 = tpu.matmul %66, %68, %cst_64 {dimension_numbers = #tpu.dot_dimension_numbers<[1], [0], [0], [1], [0, 0, 1, 1], [], []>} : vector<256x128xbf16>, vector<128x128xbf16>, vector<256x128xf32> -> vector<256x128xf32>
    %70 = arith.addf %63, %69 : vector<256x128xf32>
    %c1_65 = arith.constant 1 : index
    %c2_66 = arith.constant 2 : index
    %c0_67 = arith.constant 0 : index
    %71 = vector.load %arg9[%c1_65, %c2_66, %c0_67] : memref<18x18x128xf32, #tpu.memory_space<vmem>>, vector<16x16x128xf32>
    %72 = vector.shape_cast %71 : vector<16x16x128xf32> to vector<256x128xf32>
    %73 = arith.truncf %72 : vector<256x128xf32> to vector<256x128xbf16>
    %c5 = arith.constant 5 : index
    %c0_68 = arith.constant 0 : index
    %c0_69 = arith.constant 0 : index
    %74 = vector.load %arg5[%c5, %c0_68, %c0_69] : memref<9x128x128xbf16, #tpu.memory_space<vmem>>, vector<1x128x128xbf16>
    %75 = vector.shape_cast %74 : vector<1x128x128xbf16> to vector<128x128xbf16>
    %cst_70 = arith.constant dense<0.000000e+00> : vector<256x128xf32>
    %76 = tpu.matmul %73, %75, %cst_70 {dimension_numbers = #tpu.dot_dimension_numbers<[1], [0], [0], [1], [0, 0, 1, 1], [], []>} : vector<256x128xbf16>, vector<128x128xbf16>, vector<256x128xf32> -> vector<256x128xf32>
    %77 = arith.addf %70, %76 : vector<256x128xf32>
    %c2_71 = arith.constant 2 : index
    %c0_72 = arith.constant 0 : index
    %c0_73 = arith.constant 0 : index
    %78 = vector.load %arg9[%c2_71, %c0_72, %c0_73] : memref<18x18x128xf32, #tpu.memory_space<vmem>>, vector<16x16x128xf32>
    %79 = vector.shape_cast %78 : vector<16x16x128xf32> to vector<256x128xf32>
    %80 = arith.truncf %79 : vector<256x128xf32> to vector<256x128xbf16>
    %c6 = arith.constant 6 : index
    %c0_74 = arith.constant 0 : index
    %c0_75 = arith.constant 0 : index
    %81 = vector.load %arg5[%c6, %c0_74, %c0_75] : memref<9x128x128xbf16, #tpu.memory_space<vmem>>, vector<1x128x128xbf16>
    %82 = vector.shape_cast %81 : vector<1x128x128xbf16> to vector<128x128xbf16>
    %cst_76 = arith.constant dense<0.000000e+00> : vector<256x128xf32>
    %83 = tpu.matmul %80, %82, %cst_76 {dimension_numbers = #tpu.dot_dimension_numbers<[1], [0], [0], [1], [0, 0, 1, 1], [], []>} : vector<256x128xbf16>, vector<128x128xbf16>, vector<256x128xf32> -> vector<256x128xf32>
    %84 = arith.addf %77, %83 : vector<256x128xf32>
    %c2_77 = arith.constant 2 : index
    %c1_78 = arith.constant 1 : index
    %c0_79 = arith.constant 0 : index
    %85 = vector.load %arg9[%c2_77, %c1_78, %c0_79] : memref<18x18x128xf32, #tpu.memory_space<vmem>>, vector<16x16x128xf32>
    %86 = vector.shape_cast %85 : vector<16x16x128xf32> to vector<256x128xf32>
    %87 = arith.truncf %86 : vector<256x128xf32> to vector<256x128xbf16>
    %c7 = arith.constant 7 : index
    %c0_80 = arith.constant 0 : index
    %c0_81 = arith.constant 0 : index
    %88 = vector.load %arg5[%c7, %c0_80, %c0_81] : memref<9x128x128xbf16, #tpu.memory_space<vmem>>, vector<1x128x128xbf16>
    %89 = vector.shape_cast %88 : vector<1x128x128xbf16> to vector<128x128xbf16>
    %cst_82 = arith.constant dense<0.000000e+00> : vector<256x128xf32>
    %90 = tpu.matmul %87, %89, %cst_82 {dimension_numbers = #tpu.dot_dimension_numbers<[1], [0], [0], [1], [0, 0, 1, 1], [], []>} : vector<256x128xbf16>, vector<128x128xbf16>, vector<256x128xf32> -> vector<256x128xf32>
    %91 = arith.addf %84, %90 : vector<256x128xf32>
    %c2_83 = arith.constant 2 : index
    %c2_84 = arith.constant 2 : index
    %c0_85 = arith.constant 0 : index
    %92 = vector.load %arg9[%c2_83, %c2_84, %c0_85] : memref<18x18x128xf32, #tpu.memory_space<vmem>>, vector<16x16x128xf32>
    %93 = vector.shape_cast %92 : vector<16x16x128xf32> to vector<256x128xf32>
    %94 = arith.truncf %93 : vector<256x128xf32> to vector<256x128xbf16>
    %c8 = arith.constant 8 : index
    %c0_86 = arith.constant 0 : index
    %c0_87 = arith.constant 0 : index
    %95 = vector.load %arg5[%c8, %c0_86, %c0_87] : memref<9x128x128xbf16, #tpu.memory_space<vmem>>, vector<1x128x128xbf16>
    %96 = vector.shape_cast %95 : vector<1x128x128xbf16> to vector<128x128xbf16>
    %cst_88 = arith.constant dense<0.000000e+00> : vector<256x128xf32>
    %97 = tpu.matmul %94, %96, %cst_88 {dimension_numbers = #tpu.dot_dimension_numbers<[1], [0], [0], [1], [0, 0, 1, 1], [], []>} : vector<256x128xbf16>, vector<128x128xbf16>, vector<256x128xf32> -> vector<256x128xf32>
    %98 = arith.addf %91, %97 : vector<256x128xf32>
    %99 = tpu.transpose %98, [1, 0] : vector<256x128xf32> -> vector<128x256xf32>
    %100 = vector.extract_strided_slice %99 {offsets = [0, 0], sizes = [4, 256], strides = [1, 1]} : vector<128x256xf32> to vector<4x256xf32>
    %c0_89 = arith.constant 0 : index
    %c0_90 = arith.constant 0 : index
    %101 = vector.load %arg6[%c0_89, %c0_90] : memref<4x1xf32, #tpu.memory_space<vmem>>, vector<4x1xf32>
    %102 = vector.broadcast %101 : vector<4x1xf32> to vector<4x256xf32>
    %103 = arith.addf %100, %102 : vector<4x256xf32>
    %104 = vector.extract_strided_slice %99 {offsets = [4, 0], sizes = [4, 256], strides = [1, 1]} : vector<128x256xf32> to vector<4x256xf32>
    %c0_91 = arith.constant 0 : index
    %c0_92 = arith.constant 0 : index
    %105 = vector.load %arg7[%c0_91, %c0_92] : memref<4x1xf32, #tpu.memory_space<vmem>>, vector<4x1xf32>
    %106 = vector.broadcast %105 : vector<4x1xf32> to vector<4x256xf32>
    %107 = arith.addf %104, %106 : vector<4x256xf32>
    %108 = vector.broadcast %8 : vector<4x1xf32> to vector<4x256xf32>
    %109 = arith.subf %1, %108 : vector<4x256xf32>
    %cst_93 = arith.constant 1.000000e+00 : f32
    %110 = vector.broadcast %cst_93 : f32 to vector<4x256xf32>
    %111 = arith.addf %110, %103 : vector<4x256xf32>
    %112 = vector.broadcast %15 : vector<4x1xf32> to vector<4x256xf32>
    %113 = arith.mulf %112, %111 : vector<4x256xf32>
    %114 = arith.mulf %109, %113 : vector<4x256xf32>
    %115 = arith.addf %114, %107 : vector<4x256xf32>
    %c0_94 = arith.constant 0 : index
    %c0_95 = arith.constant 0 : index
    %c0_96 = arith.constant 0 : index
    %116 = vector.load %arg8[%c0_94, %c0_95, %c0_96] : memref<1x4x256xf32, #tpu.memory_space<vmem>>, vector<1x4x256xf32>
    %117 = vector.shape_cast %116 : vector<1x4x256xf32> to vector<4x256xf32>
    %118 = vector.shape_cast %115 : vector<4x256xf32> to vector<1x4x256xf32>
    tpu.vector_store %arg8[%c0_94, %c0_95, %c0_96], %118 {strides = array<i32>} : memref<1x4x256xf32, #tpu.memory_space<vmem>>, vector<1x4x256xf32>,
    return
  }
  func.func @transform_0(%arg0: i32) -> (i32, i32, i32) {
    %c0_i32 = arith.constant 0 : i32
    %c0_i32_0 = arith.constant 0 : i32
    %c0_i32_1 = arith.constant 0 : i32
    return %arg0, %c0_i32, %c0_i32_0 : i32, i32, i32
  }
  func.func @transform_1(%arg0: i32) -> (i32, i32, i32) {
    %c0_i32 = arith.constant 0 : i32
    %c0_i32_0 = arith.constant 0 : i32
    %c0_i32_1 = arith.constant 0 : i32
    return %arg0, %c0_i32, %c0_i32_0 : i32, i32, i32
  }
  func.func @transform_2(%arg0: i32) -> (i32, i32) {
    %c0_i32 = arith.constant 0 : i32
    %c0_i32_0 = arith.constant 0 : i32
    %c0_i32_1 = arith.constant 0 : i32
    return %c0_i32, %c0_i32_0 : i32, i32
  }
  func.func @transform_3(%arg0: i32) -> (i32, i32) {
    %c0_i32 = arith.constant 0 : i32
    %c0_i32_0 = arith.constant 0 : i32
    %c0_i32_1 = arith.constant 0 : i32
    return %c0_i32, %c0_i32_0 : i32, i32
  }
  func.func @transform_4(%arg0: i32) -> (i32, i32, i32) {
    %c0_i32 = arith.constant 0 : i32
    %c0_i32_0 = arith.constant 0 : i32
    %c0_i32_1 = arith.constant 0 : i32
    %c0_i32_2 = arith.constant 0 : i32
    return %c0_i32, %c0_i32_0, %c0_i32_1 : i32, i32, i32
  }
  func.func @transform_5(%arg0: i32) -> (i32, i32) {
    %c0_i32 = arith.constant 0 : i32
    %c0_i32_0 = arith.constant 0 : i32
    %c0_i32_1 = arith.constant 0 : i32
    return %c0_i32, %c0_i32_0 : i32, i32
  }
  func.func @transform_6(%arg0: i32) -> (i32, i32) {
    %c0_i32 = arith.constant 0 : i32
    %c0_i32_0 = arith.constant 0 : i32
    %c0_i32_1 = arith.constant 0 : i32
    return %c0_i32, %c0_i32_0 : i32, i32
  }
  func.func @transform_7(%arg0: i32) -> (i32, i32, i32) {
    %c0_i32 = arith.constant 0 : i32
    %c0_i32_0 = arith.constant 0 : i32
    %c0_i32_1 = arith.constant 0 : i32
    return %arg0, %c0_i32, %c0_i32_0 : i32, i32, i32
  }
}

</mosaic_0001>

<bundles_post_ra>
// kernel: spade_forward.1
= control target key start
LH: loop header
LB: loop body
LE: loop exit
PB: predicated region body
PF: predicated region fallthrough
CT: control target
= control target key end

     0   :  { %s4781_s24 = smov 0   ;;  %s5808_s0 = inlined_call_operand.vmem [shape: f32[2,4,256], index: 0, kind: input, shape index: {}]   ;;  %s5809_s1 = inlined_call_operand.vmem [shape: bf16[2,256,36], index: 1, kind: input, shape index: {}]   ;;  %s5810_s2 = inlined_call_operand.vmem [shape: bf16[36,128], index: 2, kind: input, shape index: {}]   ;;  %s5811_s3 = inlined_call_operand.vmem [shape: f32[1,128], index: 3, kind: input, shape index: {}]   ;;  %s5812_s4 = inlined_call_operand.vmem [shape: bf16[9,128,128], index: 4, kind: input, shape index: {}]   ;;  %s5813_s5 = inlined_call_operand.vmem [shape: f32[4,1], index: 5, kind: input, shape index: {}]   ;;  %s5814_s6 = inlined_call_operand.vmem [shape: f32[4,1], index: 6, kind: input, shape index: {}]   ;;  %s5815_s7 = inlined_call_operand.vmem [shape: f32[2,4,256], index: 7, kind: output, shape index: {}]  }
   0x1 LB: > { %s3649_s25 = sadd.s32 4294967295, %s4736_s24   ;;  %p3653_p0 = scmp.ge.s32.totalorder %s4736_s24, 1  ;;  %s4736_s24 = sphi %s4781_s24, %s17_s24  }
   0x2   : > { %p247_p1 = scmp.lt.s32.totalorder %s4736_s24, 3 }
   0x4   : > { %p248_p2 = pnand %p3653_p0, %p247_p1 }
   0x6   : > { %251 = sbr.rel (%p248_p2) target bundleno = 845 (0x34d), region = 48 }
   0xb   : > { %v4635_v0 = vld [vmem:[%s5810_s2 + $0x10] ss:$0 sps:$4 sm:$0x33]   ;;  %vm513_vm0 = vcmask 1041408   ;;  %v4636_v1 = vld [vmem:[%s5810_s2 + $0x8] sm:$0xff]   ;;  %p284_p3 = scmp.lt.s32.totalorder %s3649_s25, 1 }
   0xc   : > { %4622 = vmatprep.subr.msk.bf16.mxu0 %vm513_vm0, %v4635_v0  ;;  %v515_v2 = vsel %vm513_vm0, %v4635_v0, 0  ;;  %v4637_v3 = vld [vmem:[%s5810_s2] sm:$0xff]   ;;  %v4655_v4 = vld [vmem:[%s5812_s4 + $0x78] sm:$0xff]   ;;  %vm464_vm1 = vcmask 293888   ;;  %v4656_v9 = vld [vmem:[%s5812_s4 + $0x30] sm:$0xff]   ;;  %v4738_v30 = vmov 0.0  }
   0xd   : > { %4137 = vmatpush3.bf16.msra.mxu0 %v515_v2  ;;  %s5826_s25 = smov (!%p284_p3, %s3649_s25), 1  ;;  %4174 = vmatprep.subr.bf16.mxu1 %v4655_v4  ;;  %v4654_v6 = vld [vmem:[%s5812_s4 + $0x38] sm:$0xff]   ;;  %v4657_v12 = vld [vmem:[%s5812_s4 + $0x70] sm:$0xff]   ;;  %v4658_v14 = vld [vmem:[%s5812_s4 + $0x68] sm:$0xff]   ;;  %710 = vst [vmem:[#allocation2] sm:$0xff] %v4738_v30  ;;  %vm304_vm2 = vcmask 1043456  }
   0xe   : > { %4138 = vmatprep.subr.bf16.mxu0 %v4636_v1  ;;  %s3899_s9 = sshll.u32 %s5826_s25, 7  ;;  %4175 = vmatpush3.bf16.msra.mxu1 %v4655_v4  ;;  %v4659_v16 = vld [vmem:[%s5812_s4 + $0x28] sm:$0xff]   ;;  %v4660_v26 = vld [vmem:[%s5812_s4 + $0x60] sm:$0xff]   ;;  %v4662_v27 = vld [vmem:[%s5812_s4 + $0x58] sm:$0xff]   ;;  %711 = vst [vmem:[#allocation2 + $0x8] sm:$0xff] %v4738_v30  ;;  %s3898_s12 = sshll.u32 %s5826_s25, 3 }
   0xf   : > { %s4807_s14 = scalar_lea.vmem %s5809_s1, %s3899_s9  ;;  %4176 = vmatprep.subr.bf16.mxu1 %v4657_v12  ;;  %v4661_v28 = vld [vmem:[%s5812_s4 + $0x20] sm:$0xff]   ;;  %v4664_v29 = vld [vmem:[%s5812_s4 + $0x50] sm:$0xff]   ;;  %712 = vst [vmem:[#allocation2 + $0x10] sm:$0x3] %v4738_v30  ;;  %714 = vst [vmem:[#allocation2 + $0x198] sm:$0xff] %v4738_v30  ;;  %s288_s15 = scalar_lea.vmem %s5808_s0, %s3898_s12 }
  0x10   : > { %v4638_v5 = vld [vmem:[%s4807_s14] sm:$0xff]   ;;  %v4639_v7 = vld [vmem:[%s4807_s14 + $0x8] sm:$0xff]   ;;  %v4640_v8 = vld [vmem:[%s4807_s14 + $0x10] sm:$0xff]   ;;  %715 = vst [vmem:[#allocation2 + $0x1a0] sm:$0xff] %v4738_v30  ;;  %s298_s22 = scalar_lea.vmem %s5815_s7, %s3898_s12 }
  0x11   : > { %4139 = vmatpush3.bf16.msra.mxu0 %v4636_v1  ;;  %4142 = vmatprep.mubr.msk.bf16.mxu0 %vm464_vm1, %v4638_v5  ;;  %v4641_v10 = vld [vmem:[%s4807_s14 + $0x18] sm:$0xff]   ;;  %v4642_v11 = vld [vmem:[%s4807_s14 + $0x20] sm:$0xff]   ;;  %v4643_v13 = vld [vmem:[%s4807_s14 + $0x28] sm:$0xff]   ;;  %716 = vst [vmem:[#allocation2 + $0x1a8] sm:$0x3] %v4738_v30 }
  0x12   : > { %4140 = vmatprep.subr.bf16.mxu0 %v4637_v3  ;;  %v4644_v15 = vld [vmem:[%s4807_s14 + $0x30] sm:$0xff]   ;;  %4177 = vmatpush3.bf16.msra.mxu1 %v4657_v12  ;;  %v4645_v17 = vld [vmem:[%s4807_s14 + $0x38] sm:$0xff]   ;;  %v4646_v18 = vld [vmem:[%s4807_s14 + $0x40] sm:$0xff]   ;;  %718 = vst [vmem:[#allocation2 + $0x18] sm:$0x1] %v4738_v30 }
  0x13   : > { %4178 = vmatprep.subr.bf16.mxu1 %v4658_v14  ;;  %v4647_v19 = vld [vmem:[%s4807_s14 + $0x48] sm:$0xff]   ;;  %v4648_v20 = vld [vmem:[%s4807_s14 + $0x50] sm:$0xff]   ;;  %v4649_v21 = vld [vmem:[%s4807_s14 + $0x58] sm:$0xff]   ;;  %719 = vst [vmem:[#allocation2 + $0x30] sm:$0x1] %v4738_v30 }
  0x14   : > { %v4650_v22 = vld [vmem:[%s4807_s14 + $0x60] sm:$0xff]   ;;  %v4651_v23 = vld [vmem:[%s4807_s14 + $0x68] sm:$0xff]   ;;  %v4652_v24 = vld [vmem:[%s4807_s14 + $0x70] sm:$0xff]   ;;  %720 = vst [vmem:[#allocation2 + $0x48] sm:$0x1] %v4738_v30 }
  0x15   : > { %4141 = vmatpush3.bf16.msra.mxu0 %v4637_v3  ;;  %v4653_v25 = vld [vmem:[%s4807_s14 + $0x78] sm:$0xff]   ;;  %721 = vst [vmem:[#allocation2 + $0x60] sm:$0x1] %v4738_v30  ;;  %722 = vst [vmem:[#allocation2 + $0x78] sm:$0x1] %v4738_v30  ;;  %v4666_v32 = vld [vmem:[%s5812_s4 + $0x48] sm:$0xff]  }
  0x16   : > { %4222 = vmatprep.subr.bf16.mxu0 %v4654_v6  ;;  %4179 = vmatpush3.bf16.msra.mxu1 %v4658_v14  ;;  %723 = vst [vmem:[#allocation2 + $0x90] sm:$0x1] %v4738_v30  ;;  %724 = vst [vmem:[#allocation2 + $0xa8] sm:$0x1] %v4738_v30  ;;  %v4663_v31 = vld [vmem:[%s5812_s4 + $0x18] sm:$0xff]   ;;  %v4665_v33 = vld [vmem:[%s5812_s4 + $0x10] sm:$0xff]  }
  0x17   : > { %4180 = vmatprep.subr.bf16.mxu1 %v4660_v26  ;;  %725 = vst [vmem:[#allocation2 + $0xc0] sm:$0x1] %v4738_v30  ;;  %726 = vst [vmem:[#allocation2 + $0xd8] sm:$0x1] %v4738_v30  ;;  %v4668_v34 = vld [vmem:[%s5812_s4 + $0x40] sm:$0xff]   ;;  %v851_v36 = vld [vmem:[#allocation2 + $0x9] sm:$0xff] }
  0x18   : > { %4143 = vmatmul.mubr.msk.bf16.vlgmr.msra.gmra.mxu0 %vm464_vm1, %v4639_v7  ;;  %727 = vst [vmem:[#allocation2 + $0xf0] sm:$0x1] %v4738_v30  ;;  %728 = vst [vmem:[#allocation2 + $0x108] sm:$0x1] %v4738_v30  ;;  %v850_v35 = vld [vmem:[#allocation2 + $0x1] sm:$0xff]  ;;  %v4670_v42 = vld [vmem:[%s5812_s4 + $0xb8] sm:$0xff]  }
  0x19   : > { %4146 = vmatprep.mubr.msk.bf16.mxu0 %vm464_vm1, %v4640_v8  ;;  %4223 = vmatpush3.bf16.msra.mxu0 %v4654_v6  ;;  %729 = vst [vmem:[#allocation2 + $0x120] sm:$0x1] %v4738_v30  ;;  %730 = vst [vmem:[#allocation2 + $0x138] sm:$0x1] %v4738_v30  ;;  %v882_v37 = vpack.c.bf16 %v851_v36, %v850_v35  ;;  %v4667_v38 = vld [vmem:[%s5812_s4 + $0x8] sm:$0xff]   ;;  %v4669_v39 = vld [vmem:[%s5812_s4] sm:$0xff]  }
  0x1a   : > { %4224 = vmatprep.subr.bf16.mxu0 %v4656_v9  ;;  %4181 = vmatpush3.bf16.msra.mxu1 %v4660_v26  ;;  %731 = vst [vmem:[#allocation2 + $0x150] sm:$0x1] %v4738_v30  ;;  %732 = vst [vmem:[#allocation2 + $0x168] sm:$0x1] %v4738_v30  ;;  %v4935_v43 = vld [vmem:[%s5812_s4 + $0xf8] sm:$0xff]   ;;  %v4671_v63 = vld [vmem:[%s5812_s4 + $0xb0] sm:$0xff]  }
  0x1b   : > { %4182 = vmatprep.subr.bf16.mxu1 %v4662_v27  ;;  %733 = vst [vmem:[#allocation2 + $0x180] sm:$0x1] %v4738_v30  ;;  %736 = vst [vmem:[#allocation2 + $0x29] sm:$0x1] %v4738_v30  ;;  %4190 = vmatprep.mubr.bf16.mxu1 %v882_v37  ;;  %v4941_v44 = vld [vmem:[%s5811_s3] ss:$0 sm:$0xff] }
  0x1c   : > { %737 = vst [vmem:[#allocation2 + $0x41] sm:$0x1] %v4738_v30  ;;  %738 = vst [vmem:[#allocation2 + $0x59] sm:$0x1] %v4738_v30  ;;  %v4672_v7 = vld [vmem:[%s5812_s4 + $0xa8] sm:$0xff]  }
  0x1d   : > { %4225 = vmatpush3.bf16.msra.mxu0 %v4656_v9  ;;  %739 = vst [vmem:[#allocation2 + $0x71] sm:$0x1] %v4738_v30  ;;  %740 = vst [vmem:[#allocation2 + $0x89] sm:$0x1] %v4738_v30 }
  0x1e   : > { %4226 = vmatprep.subr.bf16.mxu0 %v4659_v16  ;;  %4183 = vmatpush3.bf16.msra.mxu1 %v4662_v27  ;;  %741 = vst [vmem:[#allocation2 + $0xa1] sm:$0x1] %v4738_v30  ;;  %742 = vst [vmem:[#allocation2 + $0xb9] sm:$0x1] %v4738_v30 }
  0x1f   : > { %4184 = vmatprep.subr.bf16.mxu1 %v4664_v29  ;;  %743 = vst [vmem:[#allocation2 + $0xd1] sm:$0x1] %v4738_v30  ;;  %744 = vst [vmem:[#allocation2 + $0xe9] sm:$0x1] %v4738_v30 }
  0x20   : > { %4147 = vmatmul.mubr.msk.bf16.gmra.mxu0 %vm464_vm1, %v4641_v10  ;;  %745 = vst [vmem:[#allocation2 + $0x101] sm:$0x1] %v4738_v30  ;;  %746 = vst [vmem:[#allocation2 + $0x119] sm:$0x1] %v4738_v30 }
  0x21   : > { %4150 = vmatprep.mubr.msk.bf16.mxu0 %vm464_vm1, %v4642_v11  ;;  %4227 = vmatpush3.bf16.msra.mxu0 %v4659_v16  ;;  %747 = vst [vmem:[#allocation2 + $0x131] sm:$0x1] %v4738_v30  ;;  %748 = vst [vmem:[#allocation2 + $0x149] sm:$0x1] %v4738_v30 }
  0x22   : > { %4228 = vmatprep.subr.bf16.mxu0 %v4661_v28  ;;  %4185 = vmatpush3.bf16.msra.mxu1 %v4664_v29  ;;  %749 = vst [vmem:[#allocation2 + $0x161] sm:$0x1] %v4738_v30  ;;  %750 = vst [vmem:[#allocation2 + $0x179] sm:$0x1] %v4738_v30 }
  0x23   : > { %751 = vst [vmem:[#allocation2 + $0x191] sm:$0x1] %v4738_v30  ;;  %735 = vst [vmem:[#allocation2 + $0x11] sm:$0x1] %v4738_v30  ;;  %4186 = vmatprep.subr.bf16.mxu1 %v4666_v32 }
  0x24   : > { %717 = vst [vmem:[#allocation2] sm:$0x1] %v4738_v30  ;;  %734 = vst [vmem:[#allocation2 + $0x198] sm:$0x1] %v4738_v30 }
  0x25   : > { %4229 = vmatpush3.bf16.msra.mxu0 %v4661_v28  ;;  %752 = vst [vmem:[#allocation2 + $0x1a9] sm:$0x1] %v4738_v30 }
  0x26   : > { %4230 = vmatprep.subr.bf16.mxu0 %v4663_v31  ;;  %4187 = vmatpush3.bf16.msra.mxu1 %v4666_v32  ;;  %v4678_v32 = vld [vmem:[%s5812_s4 + $0xe8] sm:$0xff]  }
  0x27   : > { %4188 = vmatprep.subr.bf16.mxu1 %v4668_v34 }
  0x28   : > { %4151 = vmatmul.mubr.msk.bf16.gmra.mxu0 %vm464_vm1, %v4643_v13 }
  0x29   : > { %4154 = vmatprep.mubr.msk.bf16.mxu0 %vm464_vm1, %v4644_v15  ;;  %4231 = vmatpush3.bf16.msra.mxu0 %v4663_v31  ;;  %v4675_v31 = vld [vmem:[%s5812_s4 + $0x98] sm:$0xff]  }
  0x2a   : > { %4232 = vmatprep.subr.bf16.mxu0 %v4665_v33  ;;  %4189 = vmatpush3.bf16.msra.mxu1 %v4668_v34 }
  0x2b   : > { %v786_v40 = vld [vmem:[#allocation2] sm:$0xff]  ;;  %4270 = vmatprep.subr.bf16.mxu1 %v4670_v42 }
  0x2c   : > { %v818_v41 = vpack.c.bf16 %v4738_v30, %v786_v40 }
  0x2d   : > { %4233 = vmatpush3.bf16.msra.mxu0 %v4665_v33 }
  0x2e   : > { %4234 = vmatprep.subr.bf16.mxu0 %v4667_v38 }
  0x30   : > { %4155 = vmatmul.mubr.msk.bf16.gmra.mxu0 %vm464_vm1, %v4645_v17 }
  0x31   : > { %4158 = vmatprep.mubr.msk.bf16.mxu0 %vm464_vm1, %v4646_v18  ;;  %4235 = vmatpush3.bf16.msra.mxu0 %v4667_v38 }
  0x32   : > { %4236 = vmatprep.subr.bf16.mxu0 %v4669_v39 }
  0x35   : > { %4237 = vmatpush3.bf16.msra.mxu0 %v4669_v39 }
  0x36   : > { %4318 = vmatprep.subr.bf16.mxu0 %v4935_v43 }
  0x38   : > { %4159 = vmatmul.mubr.msk.bf16.gmra.mxu0 %vm464_vm1, %v4647_v19 }
  0x39   : > { %4162 = vmatprep.mubr.msk.bf16.mxu0 %vm464_vm1, %v4648_v20 }
  0x40   : > { %4163 = vmatmul.mubr.msk.bf16.gmra.mxu0 %vm464_vm1, %v4649_v21 }
  0x41   : > { %4166 = vmatprep.mubr.msk.bf16.mxu0 %vm464_vm1, %v4650_v22 }
  0x48   : > { %4167 = vmatmul.mubr.msk.bf16.gmra.mxu0 %vm464_vm1, %v4651_v23  ;;  %v4673_v23 = vld [vmem:[%s5812_s4 + $0xa0] sm:$0xff]  }
  0x49   : > { %4170 = vmatprep.mubr.msk.bf16.mxu0 %vm464_vm1, %v4652_v24  ;;  %v4676_v24 = vld [vmem:[%s5812_s4 + $0xf0] sm:$0xff]  }
  0x50   : > { %4171 = vmatmul.mubr.msk.bf16.gmra.mxu0 %vm464_vm1, %v4653_v25 }
  0x51   : > { %4238 = vmatprep.mubr.bf16.mxu0 %v818_v41 }
  0xd8   : > { %v4144_v45 = vpop.f32.mrf.mxu0 }
  0xd9   : > { %v560_v46 = vadd.f32 %v4144_v45, %v4941_v44 }
  0xda   : > { %v551_v47 = vpop.f32.mrf.mxu0 }
  0xdb   : > { %v680_v48 = vmax.f32 %v560_v46, 0.0  ;;  %v552_v49 = vadd.f32 %v4941_v44, %v551_v47 }
  0xdc   : > { %v4145_v50 = vpop.f32.mrf.mxu0 }
  0xdd   : > { %756 = vst [vmem:[#allocation2 + $0x31] sm:$0xff] %v680_v48  ;;  %v678_v51 = vmax.f32 %v552_v49, 0.0  ;;  %v563_v52 = vadd.f32 %v4145_v50, %v4941_v44  ;;  %v4679_v49 = vld [vmem:[%s5812_s4 + $0xe0] sm:$0xff]  }
  0xde   : > { %v554_v53 = vpop.f32.mrf.mxu0 }
  0xdf   : > { %754 = vst [vmem:[#allocation2 + $0x19] sm:$0xff] %v678_v51  ;;  %v681_v54 = vmax.f32 %v563_v52, 0.0  ;;  %v555_v55 = vadd.f32 %v4941_v44, %v554_v53 }
  0xe0   : > { %v4148_v56 = vpop.f32.mrf.mxu0 }
  0xe1   : > { %757 = vst [vmem:[#allocation2 + $0x39] sm:$0xff] %v681_v54  ;;  %v679_v57 = vmax.f32 %v555_v55, 0.0  ;;  %v576_v58 = vadd.f32 %v4148_v56, %v4941_v44  ;;  %v884_v1 = vpack.c.bf16 %v681_v54, %v680_v48  ;;  %v4677_v48 = vld [vmem:[%s5812_s4 + $0x90] sm:$0xff]   ;;  %v4680_v56 = vld [vmem:[%s5812_s4 + $0x88] sm:$0xff]  }
  0xe2   : > { %v567_v59 = vpop.f32.mrf.mxu0 }
  0xe3   : > { %755 = vst [vmem:[#allocation2 + $0x21] sm:$0xff] %v679_v57  ;;  %v684_v60 = vmax.f32 %v576_v58, 0.0  ;;  %v568_v61 = vadd.f32 %v4941_v44, %v567_v59  ;;  %v883_v62 = vpack.c.bf16 %v679_v57, %v678_v51  ;;  %v4681_v57 = vld [vmem:[%s5812_s4 + $0xd8] sm:$0xff]  }
  0xe4   : > { %v4149_v0 = vpop.f32.mrf.mxu0  ;;  %v790_v18 = vld [vmem:[#allocation2 + $0x30] sm:$0xff] }
  0xe5   : > { %760 = vst [vmem:[#allocation2 + $0x61] sm:$0xff] %v684_v60  ;;  %v682_v2 = vmax.f32 %v568_v61, 0.0  ;;  %v579_v3 = vadd.f32 %v4149_v0, %v4941_v44  ;;  %4191 = vmatmul.mubr.bf16.vlgmr.msra.gmra.mxu1 %v883_v62 }
  0xe6   : > { %v570_v4 = vpop.f32.mrf.mxu0  ;;  %4271 = vmatpush3.bf16.msra.mxu1 %v4670_v42  ;;  %4194 = vmatprep.mubr.bf16.mxu1 %v884_v1  ;;  %v788_v13 = vld [vmem:[#allocation2 + $0x18] sm:$0xff] }
  0xe7   : > { %758 = vst [vmem:[#allocation2 + $0x49] sm:$0xff] %v682_v2  ;;  %v685_v5 = vmax.f32 %v579_v3, 0.0  ;;  %v571_v6 = vadd.f32 %v4941_v44, %v570_v4  ;;  %4272 = vmatprep.subr.bf16.mxu1 %v4671_v63 }
  0xe8   : > { %v4152_v8 = vpop.f32.mrf.mxu0  ;;  %v791_v11 = vld [vmem:[#allocation2 + $0x38] sm:$0xff] }
  0xe9   : > { %761 = vst [vmem:[#allocation2 + $0x69] sm:$0xff] %v685_v5  ;;  %v683_v9 = vmax.f32 %v571_v6, 0.0  ;;  %v592_v10 = vadd.f32 %v4152_v8, %v4941_v44  ;;  %v4961_v21 = vpack.c.bf16 %v791_v11, %v790_v18  ;;  %v886_v22 = vpack.c.bf16 %v685_v5, %v684_v60  ;;  %v4682_v8 = vld [vmem:[%s5812_s4 + $0xd0] sm:$0xff]   ;;  %v5028_v18 = vld [vmem:[%s5812_s4 + $0x138] sm:$0xff]  }
  0xea   : > { %v583_v12 = vpop.f32.mrf.mxu0  ;;  %v789_v14 = vld [vmem:[#allocation2 + $0x20] sm:$0xff]  ;;  %4273 = vmatpush3.bf16.msra.mxu1 %v4671_v63 }
  0xeb   : > { %759 = vst [vmem:[#allocation2 + $0x51] sm:$0xff] %v683_v9  ;;  %v688_v15 = vmax.f32 %v592_v10, 0.0  ;;  %v584_v16 = vadd.f32 %v4941_v44, %v583_v12  ;;  %v4959_v17 = vpack.c.bf16 %v789_v14, %v788_v13  ;;  %v885_v19 = vpack.c.bf16 %v683_v9, %v682_v2  ;;  %4274 = vmatprep.subr.bf16.mxu1 %v4672_v7  ;;  %v4683_v9 = vld [vmem:[%s5812_s4 + $0x80] sm:$0xff]  }
  0xec   : > { %v4153_v20 = vpop.f32.mrf.mxu0  ;;  %v794_v42 = vld [vmem:[#allocation2 + $0x60] sm:$0xff] }
  0xed   : > { %764 = vst [vmem:[#allocation2 + $0x91] sm:$0xff] %v688_v15  ;;  %v686_v25 = vmax.f32 %v584_v16, 0.0  ;;  %v595_v26 = vadd.f32 %v4153_v20, %v4941_v44  ;;  %4239 = vmatmul.mubr.bf16.vlgmr.msra.gmra.mxu0 %v4959_v17  ;;  %4195 = vmatmul.mubr.bf16.gmra.mxu1 %v885_v19  ;;  %v4684_v16 = vld [vmem:[%s5812_s4 + $0xc8] sm:$0xff]  }
  0xee   : > { %v586_v27 = vpop.f32.mrf.mxu0  ;;  %4242 = vmatprep.mubr.bf16.mxu0 %v4961_v21  ;;  %4198 = vmatprep.mubr.bf16.mxu1 %v886_v22  ;;  %v792_v37 = vld [vmem:[#allocation2 + $0x48] sm:$0xff] }
  0xef   : > { %762 = vst [vmem:[#allocation2 + $0x79] sm:$0xff] %v686_v25  ;;  %v689_v28 = vmax.f32 %v595_v26, 0.0  ;;  %v587_v29 = vadd.f32 %v4941_v44, %v586_v27  ;;  %4275 = vmatpush3.bf16.msra.mxu1 %v4672_v7  ;;  %4319 = vmatpush3.bf16.msra.mxu0 %v4935_v43 }
  0xf0   : > { %v4156_v30 = vpop.f32.mrf.mxu0  ;;  %4276 = vmatprep.subr.bf16.mxu1 %v4673_v23  ;;  %4320 = vmatprep.subr.bf16.mxu0 %v4676_v24  ;;  %v795_v35 = vld [vmem:[#allocation2 + $0x68] sm:$0xff] }
  0xf1   : > { %765 = vst [vmem:[#allocation2 + $0x99] sm:$0xff] %v689_v28  ;;  %v687_v33 = vmax.f32 %v587_v29, 0.0  ;;  %v608_v34 = vadd.f32 %v4156_v30, %v4941_v44  ;;  %v4984_v46 = vpack.c.bf16 %v795_v35, %v794_v42  ;;  %v888_v47 = vpack.c.bf16 %v689_v28, %v688_v15  ;;  %v5050_v42 = vld [vmem:[%s5812_s4 + $0x178] sm:$0xff]  }
  0xf2   : > { %v599_v36 = vpop.f32.mrf.mxu0  ;;  %v793_v38 = vld [vmem:[#allocation2 + $0x50] sm:$0xff] }
  0xf3   : > { %763 = vst [vmem:[#allocation2 + $0x81] sm:$0xff] %v687_v33  ;;  %v692_v39 = vmax.f32 %v608_v34, 0.0  ;;  %v600_v40 = vadd.f32 %v4941_v44, %v599_v36  ;;  %v4982_v41 = vpack.c.bf16 %v793_v38, %v792_v37  ;;  %v887_v43 = vpack.c.bf16 %v687_v33, %v686_v25  ;;  %4277 = vmatpush3.bf16.msra.mxu1 %v4673_v23  ;;  %v4685_v34 = vld [vmem:[%s5812_s4 + $0xc0] sm:$0xff]  }
  0xf4   : > { %4321 = vmatpush3.bf16.msra.mxu0 %v4676_v24  ;;  %v4157_v45 = vpop.f32.mrf.mxu0  ;;  %4278 = vmatprep.subr.bf16.mxu1 %v4675_v31  ;;  %v798_v3 = vld [vmem:[#allocation2 + $0x90] sm:$0xff] }
  0xf5   : > { %4322 = vmatprep.subr.bf16.mxu0 %v4678_v32  ;;  %768 = vst [vmem:[#allocation2 + $0xc1] sm:$0xff] %v692_v39  ;;  %v690_v50 = vmax.f32 %v600_v40, 0.0  ;;  %v611_v51 = vadd.f32 %v4157_v45, %v4941_v44  ;;  %4243 = vmatmul.mubr.bf16.gmra.mxu0 %v4982_v41 }
  0xf6   : > { %4199 = vmatmul.mubr.bf16.gmra.mxu1 %v887_v43  ;;  %v602_v52 = vpop.f32.mrf.mxu0  ;;  %4246 = vmatprep.mubr.bf16.mxu0 %v4984_v46  ;;  %v796_v62 = vld [vmem:[#allocation2 + $0x78] sm:$0xff] }
  0xf7   : > { %4202 = vmatprep.mubr.bf16.mxu1 %v888_v47  ;;  %766 = vst [vmem:[#allocation2 + $0xa9] sm:$0xff] %v690_v50  ;;  %v693_v53 = vmax.f32 %v611_v51, 0.0  ;;  %v603_v54 = vadd.f32 %v4941_v44, %v602_v52  ;;  %4279 = vmatpush3.bf16.msra.mxu1 %v4675_v31 }
  0xf8   : > { %4323 = vmatpush3.bf16.msra.mxu0 %v4678_v32  ;;  %v4160_v55 = vpop.f32.mrf.mxu0  ;;  %4280 = vmatprep.subr.bf16.mxu1 %v4677_v48  ;;  %v799_v60 = vld [vmem:[#allocation2 + $0x98] sm:$0xff] }
  0xf9   : > { %4324 = vmatprep.subr.bf16.mxu0 %v4679_v49  ;;  %769 = vst [vmem:[#allocation2 + $0xc9] sm:$0xff] %v693_v53  ;;  %v5002_v58 = vmax.f32 %v603_v54, 0.0  ;;  %v624_v59 = vadd.f32 %v4160_v55, %v4941_v44  ;;  %v5010_v6 = vpack.c.bf16 %v799_v60, %v798_v3  ;;  %v890_v7 = vpack.c.bf16 %v693_v53, %v692_v39 }
  0xfa   : > { %v615_v61 = vpop.f32.mrf.mxu0  ;;  %v797_v63 = vld [vmem:[#allocation2 + $0x80] sm:$0xff] }
  0xfb   : > { %767 = vst [vmem:[#allocation2 + $0xb1] sm:$0xff] %v5002_v58  ;;  %v696_v0 = vmax.f32 %v624_v59, 0.0  ;;  %v616_v1 = vadd.f32 %v4941_v44, %v615_v61  ;;  %v5007_v2 = vpack.c.bf16 %v797_v63, %v796_v62  ;;  %v889_v4 = vpack.c.bf16 %v5002_v58, %v690_v50  ;;  %4281 = vmatpush3.bf16.msra.mxu1 %v4677_v48 }
  0xfc   : > { %4325 = vmatpush3.bf16.msra.mxu0 %v4679_v49  ;;  %v4161_v5 = vpop.f32.mrf.mxu0  ;;  %4282 = vmatprep.subr.bf16.mxu1 %v4680_v56  ;;  %v802_v29 = vld [vmem:[#allocation2 + $0xc0] sm:$0xff] }
  0xfd   : > { %4326 = vmatprep.subr.bf16.mxu0 %v4681_v57  ;;  %772 = vst [vmem:[#allocation2 + $0xf1] sm:$0xff] %v696_v0  ;;  %v694_v10 = vmax.f32 %v616_v1, 0.0  ;;  %v627_v11 = vadd.f32 %v4161_v5, %v4941_v44  ;;  %4247 = vmatmul.mubr.bf16.gmra.mxu0 %v5007_v2 }
  0xfe   : > { %4203 = vmatmul.mubr.bf16.gmra.mxu1 %v889_v4  ;;  %v618_v12 = vpop.f32.mrf.mxu0  ;;  %4250 = vmatprep.mubr.bf16.mxu0 %v5010_v6  ;;  %v800_v24 = vld [vmem:[#allocation2 + $0xa8] sm:$0xff] }
  0xff   : > { %4206 = vmatprep.mubr.bf16.mxu1 %v890_v7  ;;  %770 = vst [vmem:[#allocation2 + $0xd9] sm:$0xff] %v694_v10  ;;  %v697_v13 = vmax.f32 %v627_v11, 0.0  ;;  %v619_v14 = vadd.f32 %v4941_v44, %v618_v12  ;;  %4283 = vmatpush3.bf16.msra.mxu1 %v4680_v56 }
 0x100   : > { %4327 = vmatpush3.bf16.msra.mxu0 %v4681_v57  ;;  %v4164_v15 = vpop.f32.mrf.mxu0  ;;  %4284 = vmatprep.subr.bf16.mxu1 %v4683_v9  ;;  %v803_v22 = vld [vmem:[#allocation2 + $0xc8] sm:$0xff] }
 0x101   : > { %4328 = vmatprep.subr.bf16.mxu0 %v4682_v8  ;;  %773 = vst [vmem:[#allocation2 + $0xf9] sm:$0xff] %v697_v13  ;;  %v695_v19 = vmax.f32 %v619_v14, 0.0  ;;  %v640_v20 = vadd.f32 %v4164_v15, %v4941_v44  ;;  %v5036_v32 = vpack.c.bf16 %v803_v22, %v802_v29  ;;  %v892_v33 = vpack.c.bf16 %v697_v13, %v696_v0 }
 0x102   : > { %v631_v23 = vpop.f32.mrf.mxu0  ;;  %v801_v25 = vld [vmem:[#allocation2 + $0xb0] sm:$0xff] }
 0x103   : > { %771 = vst [vmem:[#allocation2 + $0xe1] sm:$0xff] %v695_v19  ;;  %v700_v26 = vmax.f32 %v640_v20, 0.0  ;;  %v632_v27 = vadd.f32 %v4941_v44, %v631_v23  ;;  %v5032_v28 = vpack.c.bf16 %v801_v25, %v800_v24  ;;  %v5034_v30 = vpack.c.bf16 %v695_v19, %v694_v10  ;;  %4285 = vmatpush3.bf16.msra.mxu1 %v4683_v9 }
 0x104   : > { %4329 = vmatpush3.bf16.msra.mxu0 %v4682_v8  ;;  %v4165_v31 = vpop.f32.mrf.mxu0  ;;  %4366 = vmatprep.subr.bf16.mxu1 %v5028_v18  ;;  %v806_v54 = vld [vmem:[#allocation2 + $0xf0] sm:$0xff] }
 0x105   : > { %4330 = vmatprep.subr.bf16.mxu0 %v4684_v16  ;;  %776 = vst [vmem:[#allocation2 + $0x121] sm:$0xff] %v700_v26  ;;  %v698_v35 = vmax.f32 %v632_v27, 0.0  ;;  %v643_v36 = vadd.f32 %v4165_v31, %v4941_v44  ;;  %4251 = vmatmul.mubr.bf16.gmra.mxu0 %v5032_v28  ;;  %v1334_v27 = vld [vmem:[#allocation2 + $0xa] sm:$0xff] }
 0x106   : > { %4207 = vmatmul.mubr.bf16.gmra.mxu1 %v5034_v30  ;;  %v634_v37 = vpop.f32.mrf.mxu0  ;;  %4254 = vmatprep.mubr.bf16.mxu0 %v5036_v32  ;;  %v804_v49 = vld [vmem:[#allocation2 + $0xd8] sm:$0xff] }
 0x107   : > { %4210 = vmatprep.mubr.bf16.mxu1 %v892_v33  ;;  %774 = vst [vmem:[#allocation2 + $0x109] sm:$0xff] %v698_v35  ;;  %v701_v38 = vmax.f32 %v643_v36, 0.0  ;;  %v635_v39 = vadd.f32 %v4941_v44, %v634_v37 }
 0x108   : > { %4331 = vmatpush3.bf16.msra.mxu0 %v4684_v16  ;;  %v4168_v40 = vpop.f32.mrf.mxu0  ;;  %v807_v47 = vld [vmem:[#allocation2 + $0xf8] sm:$0xff] }
 0x109   : > { %4332 = vmatprep.subr.bf16.mxu0 %v4685_v34  ;;  %777 = vst [vmem:[#allocation2 + $0x129] sm:$0xff] %v701_v38  ;;  %v699_v43 = vmax.f32 %v635_v39, 0.0  ;;  %v656_v45 = vadd.f32 %v4168_v40, %v4941_v44  ;;  %v5058_v57 = vpack.c.bf16 %v807_v47, %v806_v54  ;;  %v894_v59 = vpack.c.bf16 %v701_v38, %v700_v26  ;;  %v1333_v26 = vld [vmem:[#allocation2 + $0x2] sm:$0xff] }
 0x10a   : > { %v647_v48 = vpop.f32.mrf.mxu0  ;;  %v805_v50 = vld [vmem:[#allocation2 + $0xe0] sm:$0xff]  ;;  %v1365_v36 = vpack.c.bf16 %v1334_v27, %v1333_v26 }
 0x10b   : > { %775 = vst [vmem:[#allocation2 + $0x111] sm:$0xff] %v699_v43  ;;  %v704_v51 = vmax.f32 %v656_v45, 0.0  ;;  %v648_v52 = vadd.f32 %v4941_v44, %v647_v48  ;;  %v5054_v53 = vpack.c.bf16 %v805_v50, %v804_v49  ;;  %v5056_v55 = vpack.c.bf16 %v699_v43, %v698_v35  ;;  %v1336_v43 = vld [vmem:[#allocation2 + $0x22] sm:$0xff]  ;;  %v1337_v45 = vld [vmem:[#allocation2 + $0x32] sm:$0xff]  ;;  %v1338_v49 = vld [vmem:[#allocation2 + $0x3a] sm:$0xff] }
 0x10c   : > { %4333 = vmatpush3.bf16.msra.mxu0 %v4685_v34  ;;  %v4169_v56 = vpop.f32.mrf.mxu0  ;;  %v810_v13 = vld [vmem:[#allocation2 + $0x120] sm:$0xff]  ;;  %v5102_v54 = vpack.c.bf16 %v1338_v49, %v1337_v45 }
 0x10d   : > { %4414 = vmatprep.subr.bf16.mxu0 %v5050_v42  ;;  %780 = vst [vmem:[#allocation2 + $0x151] sm:$0xff] %v704_v51  ;;  %v702_v60 = vmax.f32 %v648_v52, 0.0  ;;  %v659_v61 = vadd.f32 %v4169_v56, %v4941_v44  ;;  %4255 = vmatmul.mubr.bf16.gmra.mxu0 %v5054_v53  ;;  %v4687_v52 = vld [vmem:[%s5812_s4 + $0x130] sm:$0xff]   ;;  %v4688_v56 = vld [vmem:[%s5812_s4 + $0x128] sm:$0xff]   ;;  %v1351_v26 = vld [vmem:[#allocation2 + $0xda] sm:$0xff] }
 0x10e   : > { %4211 = vmatmul.mubr.bf16.gmra.mxu1 %v5056_v55  ;;  %v650_v62 = vpop.f32.mrf.mxu0  ;;  %4258 = vmatprep.mubr.bf16.mxu0 %v5058_v57  ;;  %v808_v8 = vld [vmem:[#allocation2 + $0x108] sm:$0xff] }
 0x10f   : > { %4214 = vmatprep.mubr.bf16.mxu1 %v894_v59  ;;  %778 = vst [vmem:[#allocation2 + $0x139] sm:$0xff] %v702_v60  ;;  %v705_v63 = vmax.f32 %v659_v61, 0.0  ;;  %v651_v0 = vadd.f32 %v4941_v44, %v650_v62  ;;  %v1339_v59 = vld [vmem:[#allocation2 + $0x4a] sm:$0xff]  ;;  %v1341_v61 = vld [vmem:[#allocation2 + $0x62] sm:$0xff] }
 0x110   : > { %v4172_v1 = vpop.f32.mrf.mxu0  ;;  %v811_v5 = vld [vmem:[#allocation2 + $0x128] sm:$0xff] }
 0x111   : > { %781 = vst [vmem:[#allocation2 + $0x159] sm:$0xff] %v705_v63  ;;  %v703_v3 = vmax.f32 %v651_v0, 0.0  ;;  %v672_v4 = vadd.f32 %v4172_v1, %v4941_v44  ;;  %v5072_v16 = vpack.c.bf16 %v811_v5, %v810_v13  ;;  %v5074_v19 = vpack.c.bf16 %v705_v63, %v704_v51  ;;  %v1342_v62 = vld [vmem:[#allocation2 + $0x6a] sm:$0xff]  ;;  %v4691_v1 = vld [vmem:[%s5812_s4 + $0x118] sm:$0xff]   ;;  %v1352_v27 = vld [vmem:[#allocation2 + $0xe2] sm:$0xff] }
 0x112   : > { %v663_v7 = vpop.f32.mrf.mxu0  ;;  %v809_v9 = vld [vmem:[#allocation2 + $0x110] sm:$0xff]  ;;  %v5112_v0 = vpack.c.bf16 %v1342_v62, %v1341_v61  ;;  %v1945_v62 = vld [vmem:[#allocation2 + $0x19] sm:$0xff] }
 0x113   : > { %779 = vst [vmem:[#allocation2 + $0x141] sm:$0xff] %v703_v3  ;;  %v708_v10 = vmax.f32 %v672_v4, 0.0  ;;  %v664_v11 = vadd.f32 %v4941_v44, %v663_v7  ;;  %v5068_v12 = vpack.c.bf16 %v809_v9, %v808_v8  ;;  %v5070_v14 = vpack.c.bf16 %v703_v3, %v702_v60  ;;  %v1340_v60 = vld [vmem:[#allocation2 + $0x52] sm:$0xff]  ;;  %v1343_v3 = vld [vmem:[#allocation2 + $0x7a] sm:$0xff]  ;;  %v1344_v4 = vld [vmem:[#allocation2 + $0x82] sm:$0xff] }
 0x114   : > { %v4173_v15 = vpop.f32.mrf.mxu0  ;;  %v814_v38 = vld [vmem:[#allocation2 + $0x150] sm:$0xff]  ;;  %v5110_v63 = vpack.c.bf16 %v1340_v60, %v1339_v59  ;;  %v1346_v7 = vld [vmem:[#allocation2 + $0x9a] sm:$0xff] }
 0x115   : > { %784 = vst [vmem:[#allocation2 + $0x181] sm:$0xff] %v708_v10  ;;  %v706_v20 = vmax.f32 %v664_v11, 0.0  ;;  %v675_v22 = vadd.f32 %v4173_v15, %v4941_v44  ;;  %4259 = vmatmul.mubr.bf16.gmra.mxu0 %v5068_v12  ;;  %v1345_v5 = vld [vmem:[#allocation2 + $0x92] sm:$0xff]  ;;  %v4695_v9 = vld [vmem:[%s5812_s4 + $0x160] sm:$0xff]   ;;  %v1347_v11 = vld [vmem:[#allocation2 + $0xaa] sm:$0xff] }
 0x116   : > { %4215 = vmatmul.mubr.bf16.gmra.mxu1 %v5070_v14  ;;  %v666_v23 = vpop.f32.mrf.mxu0  ;;  %4262 = vmatprep.mubr.bf16.mxu0 %v5072_v16  ;;  %v812_v34 = vld [vmem:[#allocation2 + $0x138] sm:$0xff]  ;;  %v5133_v8 = vpack.c.bf16 %v1346_v7, %v1345_v5  ;;  %v1349_v15 = vld [vmem:[#allocation2 + $0xc2] sm:$0xff]  ;;  %v1358_v45 = vld [vmem:[#allocation2 + $0x12a] sm:$0xff] }
 0x117   : > { %4218 = vmatprep.mubr.bf16.mxu1 %v5074_v19  ;;  %782 = vst [vmem:[#allocation2 + $0x169] sm:$0xff] %v706_v20  ;;  %v709_v24 = vmax.f32 %v675_v22, 0.0  ;;  %v667_v25 = vadd.f32 %v4941_v44, %v666_v23  ;;  %v1335_v44 = vld [vmem:[#allocation2 + $0x1a] sm:$0xff]  ;;  %v1348_v13 = vld [vmem:[#allocation2 + $0xb2] sm:$0xff]  ;;  %v1949_v7 = vld [vmem:[#allocation2 + $0x49] sm:$0xff] }
 0x118   : > { %v815_v31 = vld [vmem:[#allocation2 + $0x158] sm:$0xff]  ;;  %v5095_v51 = vpack.c.bf16 %v1336_v43, %v1335_v44  ;;  %v5151_v22 = vpack.c.bf16 %v1348_v13, %v1347_v11  ;;  %v4698_v23 = vld [vmem:[%s5812_s4 + $0x150] sm:$0xff]   ;;  %v1357_v43 = vld [vmem:[#allocation2 + $0x122] sm:$0xff] }
 0x119   : > { %785 = vst [vmem:[#allocation2 + $0x189] sm:$0xff] %v709_v24  ;;  %v707_v29 = vmax.f32 %v667_v25, 0.0  ;;  %v5082_v33 = vpack.c.bf16 %v709_v24, %v708_v10  ;;  %v5088_v40 = vpack.c.bf16 %v815_v31, %v814_v38  ;;  %v4696_v10 = vld [vmem:[%s5812_s4 + $0x108] sm:$0xff]   ;;  %v4699_v24 = vld [vmem:[%s5812_s4 + $0x100] sm:$0xff]   ;;  %v1356_v38 = vld [vmem:[#allocation2 + $0x112] sm:$0xff] }
 0x11a   : > { %v813_v35 = vld [vmem:[#allocation2 + $0x140] sm:$0xff]  ;;  %v4700_v25 = vld [vmem:[%s5812_s4 + $0x148] sm:$0xff]   ;;  %v4706_v44 = vld [vmem:[%s5812_s4 + $0x1f8] sm:$0xff]  }
 0x11b   : > { %783 = vst [vmem:[#allocation2 + $0x171] sm:$0xff] %v707_v29  ;;  %v5084_v37 = vpack.c.bf16 %v813_v35, %v812_v34  ;;  %v5086_v39 = vpack.c.bf16 %v707_v29, %v706_v20  ;;  %v1350_v20 = vld [vmem:[#allocation2 + $0xca] sm:$0xff]  ;;  %v1353_v29 = vld [vmem:[#allocation2 + $0xf2] sm:$0xff]  ;;  %v1354_v31 = vld [vmem:[#allocation2 + $0xfa] sm:$0xff]  ;;  %v5171_v34 = vpack.c.bf16 %v1352_v27, %v1351_v26 }
 0x11c   : > { %v4701_v35 = vld [vmem:[%s5812_s4 + $0x140] sm:$0xff]   ;;  %v1361_v49 = vld [vmem:[#allocation2 + $0x152] sm:$0xff] }
 0x11d   : > { %4263 = vmatmul.mubr.bf16.gmra.mxu0 %v5084_v37  ;;  %v1946_v60 = vld [vmem:[#allocation2 + $0x21] sm:$0xff]  ;;  %v4703_v5 = vld [vmem:[%s5812_s4 + $0x1b0] sm:$0xff]   ;;  %v1953_v13 = vld [vmem:[#allocation2 + $0x79] sm:$0xff] }
 0x11e   : > { %4219 = vmatmul.mubr.bf16.gmra.mxu1 %v5086_v39  ;;  %4266 = vmatprep.mubr.bf16.mxu0 %v5088_v40  ;;  %v816_v47 = vld [vmem:[#allocation2 + $0x168] sm:$0xff]  ;;  %v4709_v27 = vld [vmem:[%s5812_s4 + $0x190] sm:$0xff]  }
 0x11f   : > { %4286 = vmatprep.mubr.bf16.mxu1 %v1365_v36  ;;  %v1355_v36 = vld [vmem:[#allocation2 + $0x10a] sm:$0xff] }
 0x122   : > { %v817_v48 = vld [vmem:[#allocation2 + $0x170] sm:$0xff] }
 0x123   : > { %v5093_v50 = vpack.c.bf16 %v817_v48, %v816_v47  ;;  %v5185_v47 = vpack.c.bf16 %v1356_v38, %v1355_v36  ;;  %v1360_v48 = vld [vmem:[#allocation2 + $0x142] sm:$0xff]  ;;  %v1964_v38 = vld [vmem:[#allocation2 + $0xf9] sm:$0xff] }
 0x124   : > { %v4715_v36 = vld [vmem:[%s5812_s4 + $0x180] sm:$0xff]  }
 0x125   : > { %4267 = vmatmul.mubr.bf16.gmra.mxu0 %v5093_v50 }
 0x126   : > { %4287 = vmatmul.mubr.bf16.vlgmr.msra.gmra.mxu1 %v5095_v51  ;;  %4334 = vmatprep.mubr.bf16.mxu0 %v4959_v17  ;;  %v4689_v17 = vld [vmem:[%s5812_s4 + $0x120] sm:$0xff]  }
 0x127   : > { %4367 = vmatpush3.bf16.msra.mxu1 %v5028_v18  ;;  %4290 = vmatprep.mubr.bf16.mxu1 %v5102_v54  ;;  %v4692_v18 = vld [vmem:[%s5812_s4 + $0x170] sm:$0xff]  }
 0x128   : > { %4368 = vmatprep.subr.bf16.mxu1 %v4687_v52 }
 0x12b   : > { %4369 = vmatpush3.bf16.msra.mxu1 %v4687_v52  ;;  %v1362_v52 = vld [vmem:[#allocation2 + $0x15a] sm:$0xff] }
 0x12c   : > { %4370 = vmatprep.subr.bf16.mxu1 %v4688_v56  ;;  %v5195_v59 = vpack.c.bf16 %v1362_v52, %v1361_v49  ;;  %v2563_v49 = vld [vmem:[#allocation2 + $0x68] sm:$0xff] }
 0x12d   : > { %4335 = vmatmul.mubr.bf16.vlgmr.msra.gmra.mxu0 %v4961_v21  ;;  %v4694_v21 = vld [vmem:[%s5812_s4 + $0x168] sm:$0xff]  }
 0x12e   : > { %4291 = vmatmul.mubr.bf16.gmra.mxu1 %v5110_v63  ;;  %4338 = vmatprep.mubr.bf16.mxu0 %v4982_v41  ;;  %v5131_v41 = vpack.c.bf16 %v1344_v4, %v1343_v3  ;;  %v1950_v3 = vld [vmem:[#allocation2 + $0x51] sm:$0xff] }
 0x12f   : > { %4294 = vmatprep.mubr.bf16.mxu1 %v5112_v0  ;;  %4371 = vmatpush3.bf16.msra.mxu1 %v4688_v56 }
 0x130   : > { %4415 = vmatpush3.bf16.msra.mxu0 %v5050_v42  ;;  %4372 = vmatprep.subr.bf16.mxu1 %v4689_v17  ;;  %v4693_v42 = vld [vmem:[%s5812_s4 + $0x110] sm:$0xff]  }
 0x131   : > { %4416 = vmatprep.subr.bf16.mxu0 %v4692_v18 }
 0x133   : > { %4373 = vmatpush3.bf16.msra.mxu1 %v4689_v17  ;;  %v1977_v17 = vpack.c.bf16 %v1946_v60, %v1945_v62  ;;  %v2565_v60 = vld [vmem:[#allocation2 + $0x80] sm:$0xff]  ;;  %v2567_v62 = vld [vmem:[#allocation2 + $0x98] sm:$0xff] }
 0x134   : > { %4417 = vmatpush3.bf16.msra.mxu0 %v4692_v18  ;;  %4374 = vmatprep.subr.bf16.mxu1 %v4691_v1  ;;  %v1948_v18 = vld [vmem:[#allocation2 + $0x39] sm:$0xff] }
 0x135   : > { %4418 = vmatprep.subr.bf16.mxu0 %v4694_v21  ;;  %4339 = vmatmul.mubr.bf16.gmra.mxu0 %v4984_v46  ;;  %v4697_v46 = vld [vmem:[%s5812_s4 + $0x158] sm:$0xff]  }
 0x136   : > { %4295 = vmatmul.mubr.bf16.gmra.mxu1 %v5131_v41  ;;  %4342 = vmatprep.mubr.bf16.mxu0 %v5007_v2  ;;  %v5153_v2 = vpack.c.bf16 %v1350_v20, %v1349_v15  ;;  %v4708_v15 = vld [vmem:[%s5812_s4 + $0x1f0] sm:$0xff]   ;;  %v1956_v20 = vld [vmem:[#allocation2 + $0x99] sm:$0xff] }
 0x137   : > { %4298 = vmatprep.mubr.bf16.mxu1 %v5133_v8  ;;  %4375 = vmatpush3.bf16.msra.mxu1 %v4691_v1  ;;  %v1669_v1 = vld [vmem:[#allocation2 + $0x180] sm:$0xff] }
 0x138   : > { %4419 = vmatpush3.bf16.msra.mxu0 %v4694_v21  ;;  %4376 = vmatprep.subr.bf16.mxu1 %v4693_v42 }
 0x139   : > { %4420 = vmatprep.subr.bf16.mxu0 %v4695_v9 }
 0x13b   : > { %4377 = vmatpush3.bf16.msra.mxu1 %v4693_v42  ;;  %v1952_v42 = vld [vmem:[#allocation2 + $0x69] sm:$0xff] }
 0x13c   : > { %4421 = vmatpush3.bf16.msra.mxu0 %v4695_v9  ;;  %4378 = vmatprep.subr.bf16.mxu1 %v4696_v10  ;;  %v1954_v9 = vld [vmem:[#allocation2 + $0x81] sm:$0xff] }
 0x13d   : > { %4422 = vmatprep.subr.bf16.mxu0 %v4697_v46  ;;  %4343 = vmatmul.mubr.bf16.gmra.mxu0 %v5010_v6  ;;  %v4702_v6 = vld [vmem:[%s5812_s4 + $0x1b8] sm:$0xff]  }
 0x13e   : > { %4299 = vmatmul.mubr.bf16.gmra.mxu1 %v5151_v22  ;;  %4346 = vmatprep.mubr.bf16.mxu0 %v5032_v28  ;;  %v5173_v28 = vpack.c.bf16 %v1354_v31, %v1353_v29  ;;  %v4712_v29 = vld [vmem:[%s5812_s4 + $0x188] sm:$0xff]   ;;  %v4713_v31 = vld [vmem:[%s5812_s4 + $0x1d8] sm:$0xff]  }
 0x13f   : > { %4302 = vmatprep.mubr.bf16.mxu1 %v5153_v2  ;;  %4379 = vmatpush3.bf16.msra.mxu1 %v4696_v10  ;;  %v1951_v10 = vld [vmem:[#allocation2 + $0x61] sm:$0xff] }
 0x140   : > { %4423 = vmatpush3.bf16.msra.mxu0 %v4697_v46  ;;  %4380 = vmatprep.subr.bf16.mxu1 %v4699_v24  ;;  %v5222_v11 = vpack.c.bf16 %v1952_v42, %v1951_v10  ;;  %v5224_v46 = vpack.c.bf16 %v1954_v9, %v1953_v13  ;;  %v2569_v10 = vld [vmem:[#allocation2 + $0xb0] sm:$0xff] }
 0x141   : > { %4424 = vmatprep.subr.bf16.mxu0 %v4698_v23 }
 0x143   : > { %4381 = vmatpush3.bf16.msra.mxu1 %v4699_v24  ;;  %v4710_v24 = vld [vmem:[%s5812_s4 + $0x1e8] sm:$0xff]  }
 0x144   : > { %4425 = vmatpush3.bf16.msra.mxu0 %v4698_v23  ;;  %4462 = vmatprep.subr.bf16.mxu1 %v4702_v6  ;;  %v4707_v23 = vld [vmem:[%s5812_s4 + $0x198] sm:$0xff]  }
 0x145   : > { %4426 = vmatprep.subr.bf16.mxu0 %v4700_v25  ;;  %4347 = vmatmul.mubr.bf16.gmra.mxu0 %v5036_v32  ;;  %v5187_v32 = vpack.c.bf16 %v1358_v45, %v1357_v43  ;;  %v5281_v43 = vld [vmem:[%s5812_s4 + $0x238] sm:$0xff]  }
 0x146   : > { %4303 = vmatmul.mubr.bf16.gmra.mxu1 %v5171_v34  ;;  %4350 = vmatprep.mubr.bf16.mxu0 %v5054_v53  ;;  %v1359_v53 = vld [vmem:[#allocation2 + $0x13a] sm:$0xff] }
 0x147   : > { %4306 = vmatprep.mubr.bf16.mxu1 %v5173_v28  ;;  %v5193_v56 = vpack.c.bf16 %v1360_v48, %v1359_v53  ;;  %v1967_v53 = vld [vmem:[#allocation2 + $0x121] sm:$0xff] }
 0x148   : > { %4427 = vmatpush3.bf16.msra.mxu0 %v4700_v25  ;;  %v1955_v25 = vld [vmem:[#allocation2 + $0x91] sm:$0xff] }
 0x149   : > { %4428 = vmatprep.subr.bf16.mxu0 %v4701_v35  ;;  %v5244_v26 = vpack.c.bf16 %v1956_v20, %v1955_v25 }
 0x14c   : > { %4429 = vmatpush3.bf16.msra.mxu0 %v4701_v35  ;;  %v1959_v35 = vld [vmem:[#allocation2 + $0xc1] sm:$0xff] }
 0x14d   : > { %4510 = vmatprep.subr.bf16.mxu0 %v4706_v44  ;;  %4351 = vmatmul.mubr.bf16.gmra.mxu0 %v5058_v57  ;;  %v1363_v57 = vld [vmem:[#allocation2 + $0x16a] sm:$0xff] }
 0x14e   : > { %4307 = vmatmul.mubr.bf16.gmra.mxu1 %v5185_v47  ;;  %4354 = vmatprep.mubr.bf16.mxu0 %v5068_v12  ;;  %v1364_v12 = vld [vmem:[#allocation2 + $0x172] sm:$0xff] }
 0x14f   : > { %4310 = vmatprep.mubr.bf16.mxu1 %v5187_v32  ;;  %v5201_v61 = vpack.c.bf16 %v1364_v12, %v1363_v57  ;;  %v4720_v12 = vld [vmem:[%s5812_s4 + $0x228] sm:$0xff]  }
 0x155   : > { %4355 = vmatmul.mubr.bf16.gmra.mxu0 %v5072_v16  ;;  %v1670_v16 = vld [vmem:[#allocation2 + $0x188] sm:$0xff] }
 0x156   : > { %4311 = vmatmul.mubr.bf16.gmra.mxu1 %v5193_v56  ;;  %4358 = vmatprep.mubr.bf16.mxu0 %v5084_v37  ;;  %v1947_v37 = vld [vmem:[#allocation2 + $0x31] sm:$0xff]  ;;  %v5206_v4 = vpack.c.bf16 %v1670_v16, %v1669_v1 }
 0x157   : > { %4314 = vmatprep.mubr.bf16.mxu1 %v5195_v59  ;;  %v5208_v21 = vpack.c.bf16 %v1948_v18, %v1947_v37  ;;  %v2566_v1 = vld [vmem:[#allocation2 + $0x90] sm:$0xff] }
 0x158   : > { %v2594_v37 = vpack.c.bf16 %v2567_v62, %v2566_v1  ;;  %v2579_v62 = vld [vmem:[#allocation2 + $0x128] sm:$0xff] }
 0x15d   : > { %4359 = vmatmul.mubr.bf16.gmra.mxu0 %v5088_v40  ;;  %v5215_v40 = vpack.c.bf16 %v1950_v3, %v1949_v7  ;;  %v4721_v3 = vld [vmem:[%s5812_s4 + $0x220] sm:$0xff]  }
 0x15e   : > { %4315 = vmatmul.mubr.bf16.gmra.mxu1 %v5201_v61  ;;  %4362 = vmatprep.mubr.bf16.mxu0 %v5093_v50  ;;  %v4704_v50 = vld [vmem:[%s5812_s4 + $0x1a8] sm:$0xff]  }
 0x15f   : > { %4382 = vmatprep.mubr.bf16.mxu1 %v1977_v17  ;;  %v2564_v17 = vld [vmem:[#allocation2 + $0x78] sm:$0xff] }
 0x160   : > { %v2593_v18 = vpack.c.bf16 %v2565_v60, %v2564_v17 }
 0x165   : > { %4363 = vmatmul.mubr.bf16.gmra.mxu0 %v5206_v4 }
 0x166   : > { %4383 = vmatmul.mubr.bf16.vlgmr.msra.gmra.mxu1 %v5208_v21  ;;  %4430 = vmatprep.mubr.bf16.mxu0 %v5095_v51  ;;  %v4705_v51 = vld [vmem:[%s5812_s4 + $0x1a0] sm:$0xff]  }
 0x167   : > { %4463 = vmatpush3.bf16.msra.mxu1 %v4702_v6  ;;  %4386 = vmatprep.mubr.bf16.mxu1 %v5215_v40  ;;  %v4711_v6 = vld [vmem:[%s5812_s4 + $0x1e0] sm:$0xff]  }
 0x168   : > { %4464 = vmatprep.subr.bf16.mxu1 %v4703_v5 }
 0x16b   : > { %4465 = vmatpush3.bf16.msra.mxu1 %v4703_v5 }
 0x16c   : > { %4466 = vmatprep.subr.bf16.mxu1 %v4704_v50 }
 0x16d   : > { %4431 = vmatmul.mubr.bf16.vlgmr.msra.gmra.mxu0 %v5102_v54  ;;  %v5242_v54 = vld [vmem:[#allocation2 + $0xa9] sm:$0xff] }
 0x16e   : > { %4387 = vmatmul.mubr.bf16.gmra.mxu1 %v5222_v11  ;;  %4434 = vmatprep.mubr.bf16.mxu0 %v5110_v63  ;;  %v1983_v63 = vpack.c.bf16 %v5002_v58, %v5242_v54  ;;  %v1960_v58 = vld [vmem:[#allocation2 + $0xc9] sm:$0xff] }
 0x16f   : > { %4390 = vmatprep.mubr.bf16.mxu1 %v5224_v46  ;;  %4467 = vmatpush3.bf16.msra.mxu1 %v4704_v50 }
 0x170   : > { %4511 = vmatpush3.bf16.msra.mxu0 %v4706_v44  ;;  %4468 = vmatprep.subr.bf16.mxu1 %v4705_v51  ;;  %v4716_v44 = vld [vmem:[%s5812_s4 + $0x1c8] sm:$0xff]  }
 0x171   : > { %4512 = vmatprep.subr.bf16.mxu0 %v4708_v15 }
 0x173   : > { %4469 = vmatpush3.bf16.msra.mxu1 %v4705_v51 }
 0x174   : > { %4513 = vmatpush3.bf16.msra.mxu0 %v4708_v15  ;;  %4470 = vmatprep.subr.bf16.mxu1 %v4707_v23  ;;  %v2571_v15 = vld [vmem:[#allocation2 + $0xc8] sm:$0xff] }
 0x175   : > { %4514 = vmatprep.subr.bf16.mxu0 %v4710_v24  ;;  %4435 = vmatmul.mubr.bf16.gmra.mxu0 %v5112_v0  ;;  %v5263_v0 = vpack.c.bf16 %v1960_v58, %v1959_v35  ;;  %v4723_v58 = vld [vmem:[%s5812_s4 + $0x210] sm:$0xff]  }
 0x176   : > { %4391 = vmatmul.mubr.bf16.gmra.mxu1 %v5244_v26  ;;  %4438 = vmatprep.mubr.bf16.mxu0 %v5131_v41  ;;  %v4714_v41 = vld [vmem:[%s5812_s4 + $0x1d0] sm:$0xff]  }
 0x177   : > { %4394 = vmatprep.mubr.bf16.mxu1 %v1983_v63  ;;  %4471 = vmatpush3.bf16.msra.mxu1 %v4707_v23  ;;  %v2570_v63 = vld [vmem:[#allocation2 + $0xc0] sm:$0xff] }
 0x178   : > { %4515 = vmatpush3.bf16.msra.mxu0 %v4710_v24  ;;  %4472 = vmatprep.subr.bf16.mxu1 %v4709_v27 }
 0x179   : > { %4516 = vmatprep.subr.bf16.mxu0 %v4711_v6 }
 0x17b   : > { %4473 = vmatpush3.bf16.msra.mxu1 %v4709_v27 }
 0x17c   : > { %4517 = vmatpush3.bf16.msra.mxu0 %v4711_v6  ;;  %4474 = vmatprep.subr.bf16.mxu1 %v4712_v29  ;;  %v2596_v6 = vpack.c.bf16 %v2571_v15, %v2570_v63  ;;  %v2583_v63 = vld [vmem:[#allocation2 + $0x158] sm:$0xff] }
 0x17d   : > { %4518 = vmatprep.subr.bf16.mxu0 %v4713_v31  ;;  %4439 = vmatmul.mubr.bf16.gmra.mxu0 %v5133_v8  ;;  %v1963_v8 = vld [vmem:[#allocation2 + $0xf1] sm:$0xff] }
 0x17e   : > { %4395 = vmatmul.mubr.bf16.gmra.mxu1 %v5263_v0  ;;  %4442 = vmatprep.mubr.bf16.mxu0 %v5151_v22  ;;  %v5283_v45 = vpack.c.bf16 %v1964_v38, %v1963_v8  ;;  %v1968_v22 = vld [vmem:[#allocation2 + $0x129] sm:$0xff] }
 0x17f   : > { %4398 = vmatprep.mubr.bf16.mxu1 %v5034_v30  ;;  %4475 = vmatpush3.bf16.msra.mxu1 %v4712_v29  ;;  %v4717_v30 = vld [vmem:[%s5812_s4 + $0x1c0] sm:$0xff]   ;;  %v5293_v48 = vpack.c.bf16 %v1968_v22, %v1967_v53  ;;  %v2575_v22 = vld [vmem:[#allocation2 + $0xf8] sm:$0xff] }
 0x180   : > { %4519 = vmatpush3.bf16.msra.mxu0 %v4713_v31  ;;  %4476 = vmatprep.subr.bf16.mxu1 %v4715_v36 }
 0x181   : > { %4520 = vmatprep.subr.bf16.mxu0 %v4714_v41 }
 0x183   : > { %4477 = vmatpush3.bf16.msra.mxu1 %v4715_v36 }
 0x184   : > { %4521 = vmatpush3.bf16.msra.mxu0 %v4714_v41  ;;  %4606 = vmatprep.subr.bf16.mxu1 %v5281_v43 }
 0x185   : > { %4522 = vmatprep.subr.bf16.mxu0 %v4716_v44  ;;  %4443 = vmatmul.mubr.bf16.gmra.mxu0 %v5153_v2  ;;  %v2558_v2 = vld [vmem:[#allocation2 + $0x30] sm:$0xff] }
 0x186   : > { %4399 = vmatmul.mubr.bf16.gmra.mxu1 %v5283_v45  ;;  %4446 = vmatprep.mubr.bf16.mxu0 %v5171_v34 }
 0x187   : > { %4402 = vmatprep.mubr.bf16.mxu1 %v5056_v55  ;;  %v2559_v55 = vld [vmem:[#allocation2 + $0x38] sm:$0xff] }
 0x188   : > { %4523 = vmatpush3.bf16.msra.mxu0 %v4716_v44  ;;  %v2590_v34 = vpack.c.bf16 %v2559_v55, %v2558_v2  ;;  %v2875_v44 = vld [vmem:[#allocation2 + $0xb1] sm:$0xff] }
 0x189   : > { %4524 = vmatprep.subr.bf16.mxu0 %v4717_v30  ;;  %v2901_v2 = vpack.c.bf16 %v2875_v44, %v5242_v54  ;;  %v2582_v44 = vld [vmem:[#allocation2 + $0x150] sm:$0xff] }
 0x18c   : > { %4525 = vmatpush3.bf16.msra.mxu0 %v4717_v30 }
 0x18d   : > { %4558 = vmatprep.subr.bf16.mxu0 %v5281_v43  ;;  %4447 = vmatmul.mubr.bf16.gmra.mxu0 %v5173_v28  ;;  %v2281_v28 = vld [vmem:[#allocation2 + $0x182] sm:$0xff] }
 0x18e   : > { %4403 = vmatmul.mubr.bf16.gmra.mxu1 %v5293_v48  ;;  %4450 = vmatprep.mubr.bf16.mxu0 %v5185_v47  ;;  %v2561_v47 = vld [vmem:[#allocation2 + $0x50] sm:$0xff] }
 0x18f   : > { %4406 = vmatprep.mubr.bf16.mxu1 %v5070_v14  ;;  %v2282_v14 = vld [vmem:[#allocation2 + $0x18a] sm:$0xff] }
 0x195   : > { %4451 = vmatmul.mubr.bf16.gmra.mxu0 %v5187_v32  ;;  %v2560_v32 = vld [vmem:[#allocation2 + $0x48] sm:$0xff] }
 0x196   : > { %4407 = vmatmul.mubr.bf16.gmra.mxu1 %v5074_v19  ;;  %4454 = vmatprep.mubr.bf16.mxu0 %v5193_v56  ;;  %v5307_v19 = vpack.c.bf16 %v2282_v14, %v2281_v28  ;;  %v2591_v52 = vpack.c.bf16 %v2561_v47, %v2560_v32  ;;  %v2562_v56 = vld [vmem:[#allocation2 + $0x60] sm:$0xff]  ;;  %v2574_v14 = vld [vmem:[#allocation2 + $0xf0] sm:$0xff] }
 0x197   : > { %4410 = vmatprep.mubr.bf16.mxu1 %v5086_v39  ;;  %v4719_v39 = vld [vmem:[%s5812_s4 + $0x230] sm:$0xff]   ;;  %v2598_v32 = vpack.c.bf16 %v2575_v22, %v2574_v14 }
 0x19d   : > { %4455 = vmatmul.mubr.bf16.gmra.mxu0 %v5195_v59 }
 0x19e   : > { %4411 = vmatmul.mubr.bf16.gmra.mxu1 %v5082_v33  ;;  %4458 = vmatprep.mubr.bf16.mxu0 %v5201_v61  ;;  %v2592_v33 = vpack.c.bf16 %v2563_v49, %v2562_v56  ;;  %v4725_v49 = vld [vmem:[%s5812_s4 + $0x200] sm:$0xff]  }
 0x19f   : > { %4478 = vmatprep.mubr.bf16.mxu1 %v2590_v34 }
 0x1a5   : > { %4459 = vmatmul.mubr.bf16.gmra.mxu0 %v5307_v19  ;;  %v4192_v59 = vpop.f32.mrf.mxu1 }
 0x1a6   : > { %4479 = vmatmul.mubr.bf16.vlgmr.msra.gmra.mxu1 %v2591_v52  ;;  %4526 = vmatprep.mubr.bf16.mxu0 %v5208_v21 }
 0x1a7   : > { %4614 = vmatpush3.bf16.msra.mxu1 %v5281_v43  ;;  %4482 = vmatprep.mubr.bf16.mxu1 %v2592_v33  ;;  %v997_v57 = vpop.f32.mrf.mxu1 }
 0x1a8   : > { %4607 = vmatprep.subr.bf16.mxu1 %v4719_v39 }
 0x1a9   : > { %v4193_v61 = vpop.f32.mrf.mxu1 }
 0x1ab   : > { %4615 = vmatpush3.bf16.msra.mxu1 %v4719_v39  ;;  %v1000_v16 = vpop.f32.mrf.mxu1 }
 0x1ac   : > { %4608 = vmatprep.subr.bf16.mxu1 %v4720_v12 }
 0x1ad   : > { %v4240_v21 = vpop.f32.mrf.mxu0  ;;  %4527 = vmatmul.mubr.bf16.vlgmr.msra.gmra.mxu0 %v5215_v40  ;;  %v4196_v5 = vpop.f32.mrf.mxu1  ;;  %v4722_v40 = vld [vmem:[%s5812_s4 + $0x218] sm:$0xff]  }
 0x1ae   : > { %4483 = vmatmul.mubr.bf16.gmra.mxu1 %v2593_v18  ;;  %v5322_v7 = vadd.f32 %v4240_v21, %v4192_v59  ;;  %4530 = vmatprep.mubr.bf16.mxu0 %v5222_v11  ;;  %v2568_v11 = vld [vmem:[#allocation2 + $0xa8] sm:$0xff]  ;;  %v2578_v21 = vld [vmem:[#allocation2 + $0x120] sm:$0xff] }
 0x1af   : > { %4486 = vmatprep.mubr.bf16.mxu1 %v2594_v37  ;;  %v1206_v50 = vpop.f32.mrf.mxu0  ;;  %v1013_v42 = vpop.f32.mrf.mxu1  ;;  %4616 = vmatpush3.bf16.msra.mxu1 %v4720_v12  ;;  %v2595_v25 = vpack.c.bf16 %v2569_v10, %v2568_v11  ;;  %v2576_v18 = vld [vmem:[#allocation2 + $0x108] sm:$0xff]  ;;  %v2883_v11 = vld [vmem:[#allocation2 + $0x111] sm:$0xff] }
 0x1b0   : > { %4559 = vmatpush3.bf16.msra.mxu0 %v5281_v43  ;;  %v5326_v9 = vadd.f32 %v1206_v50, %v997_v57  ;;  %4609 = vmatprep.subr.bf16.mxu1 %v4721_v3  ;;  %v2573_v43 = vld [vmem:[#allocation2 + $0xe0] sm:$0xff]  ;;  %v2600_v50 = vpack.c.bf16 %v2579_v62, %v2578_v21 }
 0x1b1   : > { %4560 = vmatprep.subr.bf16.mxu0 %v4719_v39  ;;  %v4241_v13 = vpop.f32.mrf.mxu0  ;;  %v4197_v51 = vpop.f32.mrf.mxu1  ;;  %v2879_v57 = vld [vmem:[#allocation2 + $0xe1] sm:$0xff] }
 0x1b2   : > { %v5331_v20 = vadd.f32 %v4241_v13, %v4193_v61 }
 0x1b3   : > { %v1209_v23 = vpop.f32.mrf.mxu0  ;;  %v1016_v24 = vpop.f32.mrf.mxu1  ;;  %4617 = vmatpush3.bf16.msra.mxu1 %v4721_v3 }
 0x1b4   : > { %4561 = vmatpush3.bf16.msra.mxu0 %v4719_v39  ;;  %v5333_v27 = vadd.f32 %v1209_v23, %v1000_v16  ;;  %4610 = vmatprep.subr.bf16.mxu1 %v4722_v40  ;;  %v2878_v16 = vld [vmem:[#allocation2 + $0xd9] sm:$0xff] }
 0x1b5   : > { %4562 = vmatprep.subr.bf16.mxu0 %v4720_v12  ;;  %v4244_v29 = vpop.f32.mrf.mxu0  ;;  %4531 = vmatmul.mubr.bf16.gmra.mxu0 %v5224_v46  ;;  %v4724_v46 = vld [vmem:[%s5812_s4 + $0x208] sm:$0xff]   ;;  %v2581_v23 = vld [vmem:[#allocation2 + $0x140] sm:$0xff] }
 0x1b6   : > { %v4200_v31 = vpop.f32.mrf.mxu1  ;;  %4487 = vmatmul.mubr.bf16.gmra.mxu1 %v2595_v25  ;;  %v5339_v35 = vadd.f32 %v4244_v29, %v4196_v5  ;;  %4534 = vmatprep.mubr.bf16.mxu0 %v5244_v26  ;;  %v2572_v26 = vld [vmem:[#allocation2 + $0xd8] sm:$0xff] }
 0x1b7   : > { %4490 = vmatprep.mubr.bf16.mxu1 %v2596_v6  ;;  %v1222_v41 = vpop.f32.mrf.mxu0  ;;  %4618 = vmatpush3.bf16.msra.mxu1 %v4722_v40  ;;  %v2597_v28 = vpack.c.bf16 %v2573_v43, %v2572_v26  ;;  %v2580_v29 = vld [vmem:[#allocation2 + $0x138] sm:$0xff] }
 0x1b8   : > { %v1029_v36 = vpop.f32.mrf.mxu1  ;;  %4563 = vmatpush3.bf16.msra.mxu0 %v4720_v12  ;;  %v5342_v38 = vadd.f32 %v1222_v41, %v1013_v42  ;;  %4611 = vmatprep.subr.bf16.mxu1 %v4723_v58  ;;  %v2577_v12 = vld [vmem:[#allocation2 + $0x110] sm:$0xff] }
 0x1b9   : > { %4564 = vmatprep.subr.bf16.mxu0 %v4721_v3  ;;  %v4245_v8 = vpop.f32.mrf.mxu0 }
 0x1ba   : > { %v4201_v30 = vpop.f32.mrf.mxu1  ;;  %v5347_v53 = vadd.f32 %v4245_v8, %v4197_v51 }
 0x1bb   : > { %v1225_v55 = vpop.f32.mrf.mxu0  ;;  %4619 = vmatpush3.bf16.msra.mxu1 %v4723_v58 }
 0x1bc   : > { %v1032_v34 = vpop.f32.mrf.mxu1  ;;  %4565 = vmatpush3.bf16.msra.mxu0 %v4721_v3  ;;  %v5350_v47 = vadd.f32 %v1225_v55, %v1016_v24  ;;  %4612 = vmatprep.subr.bf16.mxu1 %v4724_v46  ;;  %v2599_v3 = vpack.c.bf16 %v2577_v12, %v2576_v18  ;;  %v2888_v12 = vld [vmem:[#allocation2 + $0x151] sm:$0xff] }
 0x1bd   : > { %4566 = vmatprep.subr.bf16.mxu0 %v4722_v40  ;;  %v4248_v52 = vpop.f32.mrf.mxu0  ;;  %4535 = vmatmul.mubr.bf16.gmra.mxu0 %v2901_v2 }
 0x1be   : > { %v4204_v39 = vpop.f32.mrf.mxu1  ;;  %4491 = vmatmul.mubr.bf16.gmra.mxu1 %v2597_v28  ;;  %v5355_v56 = vadd.f32 %v4248_v52, %v4200_v31  ;;  %4538 = vmatprep.mubr.bf16.mxu0 %v5263_v0  ;;  %v2903_v0 = vpack.c.bf16 %v2879_v57, %v2878_v16  ;;  %v2585_v28 = vld [vmem:[#allocation2 + $0x170] sm:$0xff] }
 0x1bf   : > { %4494 = vmatprep.mubr.bf16.mxu1 %v2598_v32  ;;  %v1238_v54 = vpop.f32.mrf.mxu0  ;;  %4620 = vmatpush3.bf16.msra.mxu1 %v4724_v46  ;;  %v2889_v32 = vld [vmem:[#allocation2 + $0x159] sm:$0xff] }
 0x1c0   : > { %v1045_v59 = vpop.f32.mrf.mxu1  ;;  %4567 = vmatpush3.bf16.msra.mxu0 %v4722_v40  ;;  %v5358_v33 = vadd.f32 %v1238_v54, %v1029_v36  ;;  %4613 = vmatprep.subr.bf16.mxu1 %v4725_v49  ;;  %v2584_v54 = vld [vmem:[#allocation2 + $0x168] sm:$0xff]  ;;  %v2908_v62 = vpack.c.bf16 %v2889_v32, %v2888_v12  ;;  %v3176_v32 = vld [vmem:[#allocation2 + $0x7a] sm:$0xff]  ;;  %v3178_v12 = vld [vmem:[#allocation2 + $0x92] sm:$0xff] }
 0x1c1   : > { %4568 = vmatprep.subr.bf16.mxu0 %v4723_v58  ;;  %v4249_v60 = vpop.f32.mrf.mxu0 }
 0x1c2   : > { %v4205_v61 = vpop.f32.mrf.mxu1  ;;  %v5360_v17 = vadd.f32 %v4249_v60, %v4201_v30 }
 0x1c3   : > { %v1241_v1 = vpop.f32.mrf.mxu0  ;;  %4621 = vmatpush3.bf16.msra.mxu1 %v4725_v49 }
 0x1c4   : > { %v1048_v37 = vpop.f32.mrf.mxu1  ;;  %4569 = vmatpush3.bf16.msra.mxu0 %v4723_v58  ;;  %v5362_v5 = vadd.f32 %v1241_v1, %v1032_v34  ;;  %v2882_v58 = vld [vmem:[#allocation2 + $0x109] sm:$0xff]  ;;  %v2887_v34 = vld [vmem:[#allocation2 + $0x141] sm:$0xff] }
 0x1c5   : > { %4570 = vmatprep.subr.bf16.mxu0 %v4724_v46  ;;  %v4252_v42 = vpop.f32.mrf.mxu0  ;;  %4539 = vmatmul.mubr.bf16.gmra.mxu0 %v2903_v0  ;;  %v2905_v41 = vpack.c.bf16 %v2883_v11, %v2882_v58  ;;  %v2588_v0 = vld [vmem:[#allocation2 + $0x198] sm:$0xff] }
 0x1c6   : > { %v4208_v10 = vpop.f32.mrf.mxu1  ;;  %4495 = vmatmul.mubr.bf16.gmra.mxu1 %v2599_v3  ;;  %v5364_v40 = vadd.f32 %v4252_v42, %v4204_v39  ;;  %4542 = vmatprep.mubr.bf16.mxu0 %v5283_v45  ;;  %v2601_v45 = vpack.c.bf16 %v2581_v23, %v2580_v29  ;;  %v2886_v39 = vld [vmem:[#allocation2 + $0x139] sm:$0xff]  ;;  %v3174_v23 = vld [vmem:[#allocation2 + $0x62] sm:$0xff] }
 0x1c7   : > { %4498 = vmatprep.mubr.bf16.mxu1 %v2600_v50  ;;  %v1254_v13 = vpop.f32.mrf.mxu0  ;;  %v2907_v57 = vpack.c.bf16 %v2887_v34, %v2886_v39  ;;  %v2891_v50 = vld [vmem:[#allocation2 + $0x171] sm:$0xff] }
 0x1c8   : > { %v1061_v51 = vpop.f32.mrf.mxu1  ;;  %4571 = vmatpush3.bf16.msra.mxu0 %v4724_v46  ;;  %v5367_v15 = vadd.f32 %v1254_v13, %v1045_v59  ;;  %v2602_v46 = vpack.c.bf16 %v2583_v63, %v2582_v44  ;;  %v2890_v63 = vld [vmem:[#allocation2 + $0x169] sm:$0xff] }
 0x1c9   : > { %4572 = vmatprep.subr.bf16.mxu0 %v4725_v49  ;;  %v4253_v24 = vpop.f32.mrf.mxu0  ;;  %v2909_v29 = vpack.c.bf16 %v2891_v50, %v2890_v63  ;;  %v3173_v63 = vld [vmem:[#allocation2 + $0x52] sm:$0xff] }
 0x1ca   : > { %v4209_v25 = vpop.f32.mrf.mxu1  ;;  %v5369_v6 = vadd.f32 %v4253_v24, %v4205_v61  ;;  %v2603_v61 = vpack.c.bf16 %v2585_v28, %v2584_v54  ;;  %v3175_v24 = vld [vmem:[#allocation2 + $0x6a] sm:$0xff] }
 0x1cb   : > { %v1257_v31 = vpop.f32.mrf.mxu0 }
 0x1cc   : > { %v1064_v36 = vpop.f32.mrf.mxu1  ;;  %4573 = vmatpush3.bf16.msra.mxu0 %v4725_v49  ;;  %v5371_v43 = vadd.f32 %v1257_v31, %v1048_v37  ;;  %v2892_v31 = vld [vmem:[#allocation2 + $0x181] sm:$0xff] }
 0x1cd   : > { %v4256_v8 = vpop.f32.mrf.mxu0  ;;  %4543 = vmatmul.mubr.bf16.gmra.mxu0 %v2905_v41 }
 0x1ce   : > { %v4212_v30 = vpop.f32.mrf.mxu1  ;;  %4499 = vmatmul.mubr.bf16.gmra.mxu1 %v2601_v45  ;;  %v5373_v22 = vadd.f32 %v4256_v8, %v4208_v10  ;;  %4546 = vmatprep.mubr.bf16.mxu0 %v5293_v48  ;;  %v2893_v10 = vld [vmem:[#allocation2 + $0x189] sm:$0xff]  ;;  %v3204_v45 = vpack.c.bf16 %v3175_v24, %v3174_v23 }
 0x1cf   : > { %4502 = vmatprep.mubr.bf16.mxu1 %v2602_v46  ;;  %v1270_v26 = vpop.f32.mrf.mxu0 }
 0x1d0   : > { %v1077_v55 = vpop.f32.mrf.mxu1  ;;  %v5376_v2 = vadd.f32 %v1270_v26, %v1061_v51  ;;  %v4729_v51 = vld [vmem:[#allocation2 + $0x8] sm:$0xff] }
 0x1d1   : > { %v4257_v14 = vpop.f32.mrf.mxu0  ;;  %v2605_v11 = vpack.c.bf16 %v4729_v51, %v2588_v0  ;;  %v2895_v26 = vld [vmem:[#allocation2 + $0x1a1] sm:$0xff] }
 0x1d2   : > { %v4213_v49 = vpop.f32.mrf.mxu1  ;;  %v5378_v52 = vadd.f32 %v4257_v14, %v4209_v25  ;;  %v3170_v14 = vld [vmem:[#allocation2 + $0x32] sm:$0xff] }
 0x1d3   : > { %v1273_v59 = vpop.f32.mrf.mxu0 }
 0x1d4   : > { %v1080_v60 = vpop.f32.mrf.mxu1  ;;  %v5380_v48 = vadd.f32 %v1273_v59, %v1064_v36  ;;  %v2910_v36 = vpack.c.bf16 %v2893_v10, %v2892_v31  ;;  %v3171_v59 = vld [vmem:[#allocation2 + $0x3a] sm:$0xff]  ;;  %v3181_v31 = vld [vmem:[#allocation2 + $0xb2] sm:$0xff] }
 0x1d5   : > { %v4260_v16 = vpop.f32.mrf.mxu0  ;;  %4547 = vmatmul.mubr.bf16.gmra.mxu0 %v2907_v57 }
 0x1d6   : > { %v4216_v18 = vpop.f32.mrf.mxu1  ;;  %4503 = vmatmul.mubr.bf16.gmra.mxu1 %v2603_v61  ;;  %v5382_v1 = vadd.f32 %v4260_v16, %v4212_v30  ;;  %4550 = vmatprep.mubr.bf16.mxu0 %v2908_v62  ;;  %v2894_v30 = vld [vmem:[#allocation2 + $0x199] sm:$0xff] }
 0x1d7   : > { %4506 = vmatprep.mubr.bf16.mxu1 %v5206_v4  ;;  %v1286_v37 = vpop.f32.mrf.mxu0  ;;  %v2911_v54 = vpack.c.bf16 %v2895_v26, %v2894_v30 }
 0x1d8   : > { %v1093_v3 = vpop.f32.mrf.mxu1  ;;  %v5385_v21 = vadd.f32 %v1286_v37, %v1077_v55  ;;  %v3202_v37 = vpack.c.bf16 %v3171_v59, %v3170_v14 }
 0x1d9   : > { %v4261_v42 = vpop.f32.mrf.mxu0 }
 0x1da   : > { %v4217_v13 = vpop.f32.mrf.mxu1  ;;  %v5387_v25 = vadd.f32 %v4261_v42, %v4213_v49  ;;  %v3177_v49 = vld [vmem:[#allocation2 + $0x82] sm:$0xff] }
 0x1db   : > { %v1289_v58 = vpop.f32.mrf.mxu0 }
 0x1dc   : > { %v1096_v4 = vpop.f32.mrf.mxu1  ;;  %v5389_v41 = vadd.f32 %v1289_v58, %v1080_v60  ;;  %v3179_v60 = vld [vmem:[#allocation2 + $0x9a] sm:$0xff] }
 0x1dd   : > { %v4264_v44 = vpop.f32.mrf.mxu0  ;;  %4551 = vmatmul.mubr.bf16.gmra.mxu0 %v2909_v29  ;;  %v3206_v50 = vpack.c.bf16 %v3179_v60, %v3178_v12  ;;  %v3180_v29 = vld [vmem:[#allocation2 + $0xaa] sm:$0xff] }
 0x1de   : > { %v4220_v46 = vpop.f32.mrf.mxu1  ;;  %4507 = vmatmul.mubr.bf16.gmra.mxu1 %v2605_v11  ;;  %v5391_v8 = vadd.f32 %v4264_v44, %v4216_v18  ;;  %4554 = vmatprep.mubr.bf16.mxu0 %v2910_v36  ;;  %v3205_v18 = vpack.c.bf16 %v3177_v49, %v3176_v32  ;;  %v3183_v44 = vld [vmem:[#allocation2 + $0xca] sm:$0xff]  ;;  %v3207_v14 = vpack.c.bf16 %v3181_v31, %v3180_v29 }
 0x1df   : > { %4578 = vmatprep.mubr.bf16.mxu1 %v3204_v45  ;;  %v1302_v55 = vpop.f32.mrf.mxu0  ;;  %v3182_v45 = vld [vmem:[#allocation2 + $0xc2] sm:$0xff] }
 0x1e0   : > { %v1109_v34 = vpop.f32.mrf.mxu1  ;;  %v5393_v28 = vadd.f32 %v1302_v55, %v1093_v3  ;;  %v3208_v49 = vpack.c.bf16 %v3183_v44, %v3182_v45  ;;  %v3188_v44 = vld [vmem:[#allocation2 + $0x10a] sm:$0xff] }
 0x1e1   : > { %v4265_v39 = vpop.f32.mrf.mxu0 }
 0x1e2   : > { %v4221_v57 = vpop.f32.mrf.mxu1  ;;  %v5395_v61 = vadd.f32 %v4265_v39, %v4217_v13  ;;  %v3172_v13 = vld [vmem:[#allocation2 + $0x4a] sm:$0xff] }
 0x1e3   : > { %v1305_v62 = vpop.f32.mrf.mxu0  ;;  %v3203_v26 = vpack.c.bf16 %v3173_v63, %v3172_v13 }
 0x1e4   : > { %v1112_v16 = vpop.f32.mrf.mxu1  ;;  %v5397_v0 = vadd.f32 %v1305_v62, %v1096_v4  ;;  %v3184_v62 = vld [vmem:[#allocation2 + $0xda] sm:$0xff] }
 0x1e5   : > { %v4268_v3 = vpop.f32.mrf.mxu0  ;;  %4555 = vmatmul.mubr.bf16.gmra.mxu0 %v2911_v54 }
 0x1e6   : > { %v4288_v42 = vpop.f32.mrf.mxu1  ;;  %4579 = vmatmul.mubr.bf16.vlgmr.msra.gmra.mxu1 %v3205_v18  ;;  %v5399_v10 = vadd.f32 %v4268_v3, %v4220_v46  ;;  %4574 = vmatprep.mubr.bf16.mxu0 %v3202_v37  ;;  %v3186_v37 = vld [vmem:[#allocation2 + $0xf2] sm:$0xff] }
 0x1e7   : > { %v1609_v51 = vadd.f32 %v4288_v42, %v5322_v7  ;;  %4582 = vmatprep.mubr.bf16.mxu1 %v3206_v50  ;;  %v1318_v11 = vpop.f32.mrf.mxu0  ;;  %v3187_v50 = vld [vmem:[#allocation2 + $0xfa] sm:$0xff] }
 0x1e8   : > { %v1480_v23 = vpop.f32.mrf.mxu1  ;;  %v5402_v24 = vadd.f32 %v1318_v11, %v1109_v34  ;;  %v3210_v63 = vpack.c.bf16 %v3187_v50, %v3186_v37  ;;  %v3192_v50 = vld [vmem:[#allocation2 + $0x13a] sm:$0xff] }
 0x1e9   : > { %v1607_v58 = vadd.f32 %v1480_v23, %v5326_v9  ;;  %v4269_v4 = vpop.f32.mrf.mxu0 }
 0x1ea   : > { %v4289_v36 = vpop.f32.mrf.mxu1  ;;  %v5405_v46 = vadd.f32 %v4269_v4, %v4221_v57 }
 0x1eb   : > { %v1610_v30 = vadd.f32 %v4289_v36, %v5331_v20  ;;  %v1321_v7 = vpop.f32.mrf.mxu0 }
 0x1ec   : > { %v1483_v55 = vpop.f32.mrf.mxu1  ;;  %v5408_v32 = vadd.f32 %v1321_v7, %v1112_v16  ;;  %v3185_v16 = vld [vmem:[#allocation2 + $0xe2] sm:$0xff] }
 0x1ed   : > { %v1608_v34 = vadd.f32 %v1483_v55, %v5333_v27  ;;  %v4336_v9 = vpop.f32.mrf.mxu0  ;;  %4575 = vmatmul.mubr.bf16.vlgmr.msra.gmra.mxu0 %v3203_v26  ;;  %v3191_v55 = vld [vmem:[#allocation2 + $0x12a] sm:$0xff] }
 0x1ee   : > { %v4292_v39 = vpop.f32.mrf.mxu1  ;;  %4583 = vmatmul.mubr.bf16.gmra.mxu1 %v3207_v14  ;;  %v5411_v54 = vadd.f32 %v4336_v9, %v1609_v51 }
 0x1ef   : > { %v1613_v59 = vadd.f32 %v4292_v39, %v5339_v35  ;;  %4586 = vmatprep.mubr.bf16.mxu1 %v3208_v49  ;;  %v1786_v57 = vpop.f32.mrf.mxu0  ;;  %v3209_v35 = vpack.c.bf16 %v3185_v16, %v3184_v62 }
 0x1f0   : > { %v1496_v20 = vpop.f32.mrf.mxu1  ;;  %v5414_v12 = vadd.f32 %v1786_v57, %v1607_v58 }
 0x1f1   : > { %v1611_v60 = vadd.f32 %v1496_v20, %v5342_v38  ;;  %v4337_v18 = vpop.f32.mrf.mxu0 }
 0x1f2   : > { %v4293_v27 = vpop.f32.mrf.mxu1  ;;  %v5417_v3 = vadd.f32 %v4337_v18, %v1610_v30  ;;  %v3189_v30 = vld [vmem:[#allocation2 + $0x112] sm:$0xff] }
 0x1f3   : > { %v1614_v42 = vadd.f32 %v4293_v27, %v5347_v53  ;;  %v1789_v51 = vpop.f32.mrf.mxu0  ;;  %v3211_v9 = vpack.c.bf16 %v3189_v30, %v3188_v44  ;;  %v3194_v18 = vld [vmem:[#allocation2 + $0x152] sm:$0xff] }
 0x1f4   : > { %v1499_v11 = vpop.f32.mrf.mxu1  ;;  %v5420_v13 = vadd.f32 %v1789_v51, %v1608_v34 }
 0x1f5   : > { %v1612_v23 = vadd.f32 %v1499_v11, %v5350_v47  ;;  %v4340_v58 = vpop.f32.mrf.mxu0  ;;  %v3190_v47 = vld [vmem:[#allocation2 + $0x122] sm:$0xff] }
 0x1f6   : > { %v4296_v38 = vpop.f32.mrf.mxu1  ;;  %4587 = vmatmul.mubr.bf16.gmra.mxu1 %v3209_v35  ;;  %v5423_v29 = vadd.f32 %v4340_v58, %v1613_v59  ;;  %v3212_v57 = vpack.c.bf16 %v3191_v55, %v3190_v47 }
 0x1f7   : > { %v1617_v31 = vadd.f32 %v4296_v38, %v5355_v56  ;;  %4590 = vmatprep.mubr.bf16.mxu1 %v3210_v63  ;;  %v1802_v4 = vpop.f32.mrf.mxu0 }
 0x1f8   : > { %v1512_v36 = vpop.f32.mrf.mxu1  ;;  %v5426_v45 = vadd.f32 %v1802_v4, %v1611_v60 }
 0x1f9   : > { %v1615_v53 = vadd.f32 %v1512_v36, %v5358_v33  ;;  %v4341_v7 = vpop.f32.mrf.mxu0 }
 0x1fa   : > { %v4297_v26 = vpop.f32.mrf.mxu1  ;;  %v5429_v14 = vadd.f32 %v4341_v7, %v1614_v42  ;;  %v3195_v42 = vld [vmem:[#allocation2 + $0x15a] sm:$0xff] }
 0x1fb   : > { %v1618_v34 = vadd.f32 %v4297_v26, %v5360_v17  ;;  %v1805_v49 = vpop.f32.mrf.mxu0 }
 0x1fc   : > { %v1515_v56 = vpop.f32.mrf.mxu1  ;;  %v5432_v39 = vadd.f32 %v1805_v49, %v1612_v23 }
 0x1fd   : > { %v1616_v59 = vadd.f32 %v1515_v56, %v5362_v5  ;;  %v4344_v33 = vpop.f32.mrf.mxu0  ;;  %v3193_v5 = vld [vmem:[#allocation2 + $0x142] sm:$0xff] }
 0x1fe   : > { %v4300_v20 = vpop.f32.mrf.mxu1  ;;  %4591 = vmatmul.mubr.bf16.gmra.mxu1 %v3211_v9  ;;  %v5435_v60 = vadd.f32 %v4344_v33, %v1617_v31  ;;  %v3213_v38 = vpack.c.bf16 %v3193_v5, %v3192_v50  ;;  %v3214_v31 = vpack.c.bf16 %v3195_v42, %v3194_v18 }
 0x1ff   : > { %v1621_v62 = vadd.f32 %v4300_v20, %v5364_v40  ;;  %4594 = vmatprep.mubr.bf16.mxu1 %v3212_v57  ;;  %v1818_v16 = vpop.f32.mrf.mxu0  ;;  %v5447_v40 = vld [vmem:[%s288_s15] sm:$0xff]  ;;  %v3197_v57 = vld [vmem:[#allocation2 + $0x172] sm:$0xff] }
 0x200   : > { %v1528_v17 = vpop.f32.mrf.mxu1  ;;  %v5439_v27 = vadd.f32 %v1818_v16, %v1615_v53  ;;  %5817 = vst [vmem:[#allocation3_spill] sm:$0xff] %v5447_v40  ;;  %v302_v63 = vcombine.high %v5447_v40, %v5447_v40  ;;  %v305_v53 = vsel %vm304_vm2, %v5447_v40, 0.0  ;;  %v310_v26 = vmul.f32 %v5447_v40, %v5447_v40 }
 0x201   : > { %v1619_v37 = vadd.f32 %v1528_v17, %v5367_v15  ;;  %v4345_v51 = vpop.f32.mrf.mxu0 }
 0x202   : > { %v4301_v11 = vpop.f32.mrf.mxu1  ;;  %v5449_v35 = vadd.f32 %v4345_v51, %v1618_v34  ;;  %v306_v44 = vsel %vm304_vm2, %v302_v63, 0.0  ;;  %v314_v33 = vsel %vm304_vm2, %v310_v26, 0.0 }
 0x203   : > { %v1622_v23 = vadd.f32 %v4301_v11, %v5369_v6  ;;  %v1821_v15 = vpop.f32.mrf.mxu0  ;;  %v307_v6 = vadd.f32 %v306_v44, %v305_v53 }
 0x204   : > { %v1531_v58 = vpop.f32.mrf.mxu1  ;;  %v5454_v4 = vadd.f32 %v1821_v15, %v1616_v59  ;;  %v3196_v59 = vld [vmem:[#allocation2 + $0x16a] sm:$0xff] }
 0x205   : > { %v1620_v36 = vadd.f32 %v1531_v58, %v5371_v43  ;;  %v4348_v30 = vpop.f32.mrf.mxu0  ;;  %308 = vadd.xlane.f32.xlu0 %v307_v6  ;;  %v312_v43 = vcombine.high %v310_v26, %v310_v26  ;;  %v3215_v42 = vpack.c.bf16 %v3197_v57, %v3196_v59 }
 0x206   : > { %v4304_v7 = vpop.f32.mrf.mxu1  ;;  %4595 = vmatmul.mubr.bf16.gmra.mxu1 %v3213_v38  ;;  %v5462_v47 = vadd.f32 %v4348_v30, %v1621_v62 }
 0x207   : > { %v1625_v55 = vadd.f32 %v4304_v7, %v5373_v22  ;;  %4598 = vmatprep.mubr.bf16.mxu1 %v3214_v31  ;;  %v1834_v34 = vpop.f32.mrf.mxu0  ;;  %v315_v62 = vsel %vm304_vm2, %v312_v43, 0.0 }
 0x208   : > { %v1544_v49 = vpop.f32.mrf.mxu1  ;;  %v5465_v56 = vadd.f32 %v1834_v34, %v1619_v37  ;;  %v316_v18 = vadd.f32 %v315_v62, %v314_v33 }
 0x209   : > { %v1623_v9 = vadd.f32 %v1544_v49, %v5376_v2  ;;  %v4349_v20 = vpop.f32.mrf.mxu0 }
 0x20a   : > { %v4305_v16 = vpop.f32.mrf.mxu1  ;;  %v5470_v17 = vadd.f32 %v4349_v20, %v1622_v23  ;;  %317 = vadd.xlane.f32.xlu0 %v316_v18  ;;  %v3200_v23 = vld [vmem:[#allocation2 + $0x19a] sm:$0xff] }
 0x20b   : > { %v1626_v22 = vadd.f32 %v4305_v16, %v5378_v52  ;;  %v1837_v50 = vpop.f32.mrf.mxu0  ;;  %v3201_v52 = vld [vmem:[#allocation2 + $0x1a2] sm:$0xff] }
 0x20c   : > { %v1547_v5 = vpop.f32.mrf.mxu1  ;;  %v5473_v37 = vadd.f32 %v1837_v50, %v1620_v36  ;;  %v3217_v44 = vpack.c.bf16 %v3201_v52, %v3200_v23 }
 0x20d   : > { %v1624_v2 = vadd.f32 %v1547_v5, %v5380_v48  ;;  %v4352_v51 = vpop.f32.mrf.mxu0 }
 0x20e   : > { %v4308_v11 = vpop.f32.mrf.mxu1  ;;  %4599 = vmatmul.mubr.bf16.gmra.mxu1 %v3215_v42  ;;  %v5476_v63 = vadd.f32 %v4352_v51, %v1625_v55 }
 0x20f   : > { %v1629_v15 = vadd.f32 %v4308_v11, %v5382_v1  ;;  %4602 = vmatprep.mubr.bf16.mxu1 %v5307_v19  ;;  %v1850_v58 = vpop.f32.mrf.mxu0 }
 0x210   : > { %v1560_v38 = vpop.f32.mrf.mxu1  ;;  %v5480_v31 = vadd.f32 %v1850_v58, %v1623_v9 }
 0x211   : > { %v1627_v36 = vadd.f32 %v1560_v38, %v5385_v21  ;;  %v4353_v53 = vpop.f32.mrf.mxu0 }
 0x212   : > { %v4309_v48 = vpop.f32.mrf.mxu1  ;;  %v5483_v30 = vadd.f32 %v4353_v53, %v1626_v22 }
 0x213   : > { %v1630_v7 = vadd.f32 %v4309_v48, %v5387_v25  ;;  %v1853_v6 = vpop.f32.mrf.mxu0 }
 0x214   : > { %v1563_v26 = vpop.f32.mrf.mxu1  ;;  %v5486_v1 = vadd.f32 %v1853_v6, %v1624_v2 }
 0x215   : > { %v1628_v19 = vadd.f32 %v1563_v26, %v5389_v41  ;;  %v4356_v55 = vpop.f32.mrf.mxu0 }
 0x216   : > { %v4312_v34 = vpop.f32.mrf.mxu1  ;;  %4603 = vmatmul.mubr.bf16.gmra.mxu1 %v3217_v44  ;;  %v5489_v49 = vadd.f32 %v4356_v55, %v1629_v15  ;;  %v4739_v15 = vmov 0  }
 0x217   : > { %v1633_v21 = vadd.f32 %v4312_v34, %v5391_v8  ;;  %v1866_v43 = vpop.f32.mrf.mxu0  ;;  %4634 = vset.pattern.permute.xlu0 %v4739_v15 }
 0x218   : > { %v1576_v9 = vpop.f32.mrf.mxu1  ;;  %v5492_v59 = vadd.f32 %v1866_v43, %v1627_v36 }
 0x219   : > { %v1631_v57 = vadd.f32 %v1576_v9, %v5393_v28  ;;  %v4357_v25 = vpop.f32.mrf.mxu0 }
 0x21a   : > { %v4313_v33 = vpop.f32.mrf.mxu1  ;;  %v5495_v20 = vadd.f32 %v4357_v25, %v1630_v7 }
 0x21b   : > { %v1634_v16 = vadd.f32 %v4313_v33, %v5395_v61  ;;  %v1869_v41 = vpop.f32.mrf.mxu0  ;;  %v3540_v61 = vld [vmem:[%s5813_s5] sm:$0xf] }
 0x21c   : > { %v1579_v62 = vpop.f32.mrf.mxu1  ;;  %v5498_v22 = vadd.f32 %v1869_v41, %v1628_v19 }
 0x21d   : > { %v1632_v18 = vadd.f32 %v1579_v62, %v5397_v0  ;;  %v4360_v50 = vpop.f32.mrf.mxu0 }
 0x21e   : > { %v4316_v8 = vpop.f32.mrf.mxu1  ;;  %v5501_v5 = vadd.f32 %v4360_v50, %v1633_v21 }
 0x21f   : > { %v1637_v42 = vadd.f32 %v4316_v8, %v5399_v10  ;;  %v1882_v2 = vpop.f32.mrf.mxu0 }
 0x220   : > { %v1592_v28 = vpop.f32.mrf.mxu1  ;;  %v5504_v51 = vadd.f32 %v1882_v2, %v1631_v57  ;;  %3543 = vperm.xlu0 %4634, %v3540_v61  }
 0x221   : > { %v1635_v11 = vadd.f32 %v1592_v28, %v5402_v24  ;;  %v4361_v23 = vpop.f32.mrf.mxu0  ;;  %v3548_v24 = vld [vmem:[%s5814_s6] sm:$0xf] }
 0x222   : > { %v4317_v0 = vpop.f32.mrf.mxu1  ;;  %v5510_v52 = vadd.f32 %v4361_v23, %v1634_v16 }
 0x223   : > { %v1638_v58 = vadd.f32 %v4317_v0, %v5405_v46  ;;  %v1885_v10 = vpop.f32.mrf.mxu0 }
 0x224   : > { %v1595_v38 = vpop.f32.mrf.mxu1  ;;  %v5513_v36 = vadd.f32 %v1885_v10, %v1632_v18  ;;  %3551 = vperm.xlu0 %4634, %v3548_v24  }
 0x225   : > { %v1636_v53 = vadd.f32 %v1595_v38, %v5408_v32  ;;  %v4364_v48 = vpop.f32.mrf.mxu0 }
 0x226   : > { %v4384_v44 = vpop.f32.mrf.mxu1  ;;  %v5519_v7 = vadd.f32 %v4364_v48, %v1637_v42 }
 0x227   : > { %v2221_v6 = vadd.f32 %v4384_v44, %v5411_v54  ;;  %v1898_v26 = vpop.f32.mrf.mxu0 }
 0x228   : > { %v2092_v46 = vpop.f32.mrf.mxu1  ;;  %v5522_v19 = vadd.f32 %v1898_v26, %v1635_v11 }
 0x229   : > { %v2219_v55 = vadd.f32 %v2092_v46, %v5414_v12  ;;  %v4365_v34 = vpop.f32.mrf.mxu0 }
 0x22a   : > { %v4385_v21 = vpop.f32.mrf.mxu1  ;;  %v5525_v32 = vadd.f32 %v4365_v34, %v1638_v58 }
 0x22b   : > { %v2222_v43 = vadd.f32 %v4385_v21, %v5417_v3  ;;  %v1901_v9 = vpop.f32.mrf.mxu0 }
 0x22c   : > { %v2095_v57 = vpop.f32.mrf.mxu1  ;;  %v5528_v25 = vadd.f32 %v1901_v9, %v1636_v53 }
 0x22d   : > { %v2220_v33 = vadd.f32 %v2095_v57, %v5420_v13  ;;  %v4432_v54 = vpop.f32.mrf.mxu0 }
 0x22e   : > { %v4388_v16 = vpop.f32.mrf.mxu1  ;;  %v5531_v41 = vadd.f32 %v4432_v54, %v2221_v6 }
 0x22f   : > { %v2225_v62 = vadd.f32 %v4388_v16, %v5423_v29  ;;  %v2398_v18 = vpop.f32.mrf.mxu0 }
 0x230   : > { %v2108_v12 = vpop.f32.mrf.mxu1  ;;  %v5534_v50 = vadd.f32 %v2398_v18, %v2219_v55 }
 0x231   : > { %v2223_v8 = vadd.f32 %v2108_v12, %v5426_v45  ;;  %v4433_v42 = vpop.f32.mrf.mxu0 }
 0x232   : > { %v4389_v3 = vpop.f32.mrf.mxu1  ;;  %v5537_v2 = vadd.f32 %v4433_v42, %v2222_v43 }
 0x233   : > { %v2226_v28 = vadd.f32 %v4389_v3, %v5429_v14  ;;  %v2401_v11 = vpop.f32.mrf.mxu0 }
 0x234   : > { %v2111_v13 = vpop.f32.mrf.mxu1  ;;  %v5540_v15 = vadd.f32 %v2401_v11, %v2220_v33 }
 0x235   : > { %v2224_v61 = vadd.f32 %v2111_v13, %v5432_v39  ;;  %v4436_v23 = vpop.f32.mrf.mxu0 }
 0x236   : > { %v4392_v29 = vpop.f32.mrf.mxu1  ;;  %v5543_v0 = vadd.f32 %v4436_v23, %v2225_v62 }
 0x237   : > { %v2229_v58 = vadd.f32 %v4392_v29, %v5435_v60  ;;  %v2414_v10 = vpop.f32.mrf.mxu0 }
 0x238   : > { %v2124_v45 = vpop.f32.mrf.mxu1  ;;  %v5546_v38 = vadd.f32 %v2414_v10, %v2223_v8 }
 0x239   : > { %v2227_v53 = vadd.f32 %v2124_v45, %v5439_v27  ;;  %v4437_v24 = vpop.f32.mrf.mxu0 }
 0x23a   : > { %v4393_v14 = vpop.f32.mrf.mxu1  ;;  %v5549_v48 = vadd.f32 %v4437_v24, %v2226_v28 }
 0x23b   : > { %v2230_v44 = vadd.f32 %v4393_v14, %v5449_v35  ;;  %v2417_v6 = vpop.f32.mrf.mxu0 }
 0x23c   : > { %v2127_v39 = vpop.f32.mrf.mxu1  ;;  %v5552_v26 = vadd.f32 %v2417_v6, %v2224_v61 }
 0x23d   : > { %v2228_v46 = vadd.f32 %v2127_v39, %v5454_v4  ;;  %v4440_v55 = vpop.f32.mrf.mxu0 }
 0x23e   : > { %v4396_v60 = vpop.f32.mrf.mxu1  ;;  %v5555_v34 = vadd.f32 %v4440_v55, %v2229_v58 }
 0x23f   : > { %v2233_v21 = vadd.f32 %v4396_v60, %v5462_v47  ;;  %v2430_v43 = vpop.f32.mrf.mxu0 }
 0x240   : > { %v2140_v27 = vpop.f32.mrf.mxu1  ;;  %v5558_v9 = vadd.f32 %v2430_v43, %v2227_v53 }
 0x241   : > { %v2231_v57 = vadd.f32 %v2140_v27, %v5465_v56  ;;  %v4441_v33 = vpop.f32.mrf.mxu0 }
 0x242   : > { %v4397_v35 = vpop.f32.mrf.mxu1  ;;  %v5561_v54 = vadd.f32 %v4441_v33, %v2230_v44 }
 0x243   : > { %v2234_v16 = vadd.f32 %v4397_v35, %v5470_v17  ;;  %v2433_v62 = vpop.f32.mrf.mxu0 }
 0x244   : > { %v2143_v4 = vpop.f32.mrf.mxu1  ;;  %v5564_v18 = vadd.f32 %v2433_v62, %v2228_v46 }
 0x245   : > { %v2232_v12 = vadd.f32 %v2143_v4, %v5473_v37  ;;  %v4444_v8 = vpop.f32.mrf.mxu0 }
 0x246   : > { %v4400_v47 = vpop.f32.mrf.mxu1  ;;  %v5567_v42 = vadd.f32 %v4444_v8, %v2233_v21 }
 0x247   : > { %v2237_v3 = vadd.f32 %v4400_v47, %v5476_v63  ;;  %v2446_v28 = vpop.f32.mrf.mxu0 }
 0x248   : > { %v2156_v56 = vpop.f32.mrf.mxu1  ;;  %v5570_v11 = vadd.f32 %v2446_v28, %v2231_v57 }
 0x249   : > { %v2235_v13 = vadd.f32 %v2156_v56, %v5480_v31  ;;  %v4445_v61 = vpop.f32.mrf.mxu0 }
 0x24a   : > { %v4401_v17 = vpop.f32.mrf.mxu1  ;;  %v5573_v23 = vadd.f32 %v4445_v61, %v2234_v16 }
 0x24b   : > { %v2238_v29 = vadd.f32 %v4401_v17, %v5483_v30  ;;  %v2449_v58 = vpop.f32.mrf.mxu0 }
 0x24c   : > { %v2159_v37 = vpop.f32.mrf.mxu1  ;;  %v5576_v10 = vadd.f32 %v2449_v58, %v2232_v12 }
 0x24d   : > { %v2236_v45 = vadd.f32 %v2159_v37, %v5486_v1  ;;  %v4448_v53 = vpop.f32.mrf.mxu0 }
 0x24e   : > { %v4404_v63 = vpop.f32.mrf.mxu1  ;;  %v5579_v24 = vadd.f32 %v4448_v53, %v2237_v3 }
 0x24f   : > { %v2241_v14 = vadd.f32 %v4404_v63, %v5489_v49  ;;  %v2462_v44 = vpop.f32.mrf.mxu0 }
 0x250   : > { %v2172_v31 = vpop.f32.mrf.mxu1  ;;  %v5582_v6 = vadd.f32 %v2462_v44, %v2235_v13 }
 0x251   : > { %v2239_v39 = vadd.f32 %v2172_v31, %v5492_v59  ;;  %v4449_v46 = vpop.f32.mrf.mxu0 }
 0x252   : > { %v4405_v30 = vpop.f32.mrf.mxu1  ;;  %v5585_v55 = vadd.f32 %v4449_v46, %v2238_v29 }
 0x253   : > { %v2242_v60 = vadd.f32 %v4405_v30, %v5495_v20  ;;  %v2465_v21 = vpop.f32.mrf.mxu0 }
 0x254   : > { %v2175_v1 = vpop.f32.mrf.mxu1  ;;  %v5588_v43 = vadd.f32 %v2465_v21, %v2236_v45 }
 0x255   : > { %v2240_v27 = vadd.f32 %v2175_v1, %v5498_v22  ;;  %v4452_v57 = vpop.f32.mrf.mxu0 }
 0x256   : > { %v4408_v49 = vpop.f32.mrf.mxu1  ;;  %v5591_v33 = vadd.f32 %v4452_v57, %v2241_v14 }
 0x257   : > { %v2245_v35 = vadd.f32 %v4408_v49, %v5501_v5  ;;  %v2478_v16 = vpop.f32.mrf.mxu0 }
 0x258   : > { %v2188_v59 = vpop.f32.mrf.mxu1  ;;  %v5594_v62 = vadd.f32 %v2478_v16, %v2239_v39 }
 0x259   : > { %v2243_v4 = vadd.f32 %v2188_v59, %v5504_v51  ;;  %v4453_v12 = vpop.f32.mrf.mxu0 }
 0x25a   : > { %v4409_v20 = vpop.f32.mrf.mxu1  ;;  %v5597_v8 = vadd.f32 %v4453_v12, %v2242_v60 }
 0x25b   : > { %v2246_v47 = vadd.f32 %v4409_v20, %v5510_v52  ;;  %v2481_v3 = vpop.f32.mrf.mxu0 }
 0x25c   : > { %v2191_v22 = vpop.f32.mrf.mxu1  ;;  %v5600_v28 = vadd.f32 %v2481_v3, %v2240_v27 }
 0x25d   : > { %v2244_v56 = vadd.f32 %v2191_v22, %v5513_v36  ;;  %v4456_v13 = vpop.f32.mrf.mxu0 }
 0x25e   : > { %v4412_v5 = vpop.f32.mrf.mxu1  ;;  %v5603_v61 = vadd.f32 %v4456_v13, %v2245_v35 }
 0x25f   : > { %v2249_v17 = vadd.f32 %v4412_v5, %v5519_v7  ;;  %v2494_v29 = vpop.f32.mrf.mxu0 }
 0x260   : > { %v2204_v51 = vpop.f32.mrf.mxu1  ;;  %v5606_v58 = vadd.f32 %v2494_v29, %v2243_v4 }
 0x261   : > { %v2247_v37 = vadd.f32 %v2204_v51, %v5522_v19  ;;  %v4457_v45 = vpop.f32.mrf.mxu0 }
 0x262   : > { %v4413_v52 = vpop.f32.mrf.mxu1  ;;  %v5609_v53 = vadd.f32 %v4457_v45, %v2246_v47 }
 0x263   : > { %v2250_v63 = vadd.f32 %v4413_v52, %v5525_v32  ;;  %v2497_v14 = vpop.f32.mrf.mxu0 }
 0x264   : > { %v2207_v36 = vpop.f32.mrf.mxu1  ;;  %v5612_v44 = vadd.f32 %v2497_v14, %v2244_v56 }
 0x265   : > { %v2248_v31 = vadd.f32 %v2207_v36, %v5528_v25  ;;  %v4460_v39 = vpop.f32.mrf.mxu0 }
 0x266   : > { %v4480_v7 = vpop.f32.mrf.mxu1  ;;  %v5615_v46 = vadd.f32 %v4460_v39, %v2249_v17 }
 0x267   : > { %v2834_v30 = vadd.f32 %v4480_v7, %v5531_v41  ;;  %v2510_v60 = vpop.f32.mrf.mxu0 }
 0x268   : > { %v2705_v19 = vpop.f32.mrf.mxu1  ;;  %v5618_v21 = vadd.f32 %v2510_v60, %v2247_v37 }
 0x269   : > { %v5621_v1 = vadd.f32 %v2705_v19, %v5534_v50  ;;  %v4461_v32 = vpop.f32.mrf.mxu0 }
 0x26a   : > { %v4481_v27 = vpop.f32.mrf.mxu1  ;;  %v5623_v57 = vadd.f32 %v4461_v32, %v2250_v63 }
 0x26b   : > { %v2835_v49 = vadd.f32 %v4481_v27, %v5537_v2  ;;  %v2513_v25 = vpop.f32.mrf.mxu0 }
 0x26c   : > { %v2708_v35 = vpop.f32.mrf.mxu1  ;;  %v5626_v16 = vadd.f32 %v2513_v25, %v2248_v31 }
 0x26d   : > { %v5629_v59 = vadd.f32 %v2708_v35, %v5540_v15  ;;  %v4528_v41 = vpop.f32.mrf.mxu0 }
 0x26e   : > { %v4484_v4 = vpop.f32.mrf.mxu1  ;;  %v5631_v12 = vadd.f32 %v4528_v41, %v2834_v30 }
 0x26f   : > { %v2838_v50 = vadd.f32 %v4484_v4, %v5543_v0  ;;  %v5634_v20 = vpop.f32.mrf.mxu0 }
 0x270   : > { %v2721_v47 = vpop.f32.mrf.mxu1 }
 0x271   : > { %v2836_v3 = vadd.f32 %v2721_v47, %v5546_v38  ;;  %v4529_v22 = vpop.f32.mrf.mxu0 }
 0x272   : > { %v4485_v2 = vpop.f32.mrf.mxu1  ;;  %v5637_v56 = vadd.f32 %v4529_v22, %v2835_v49 }
 0x273   : > { %v2839_v13 = vadd.f32 %v4485_v2, %v5549_v48  ;;  %v5640_v5 = vpop.f32.mrf.mxu0 }
 0x274   : > { %v2724_v15 = vpop.f32.mrf.mxu1 }
 0x275   : > { %v2837_v17 = vadd.f32 %v2724_v15, %v5552_v26  ;;  %v4532_v29 = vpop.f32.mrf.mxu0 }
 0x276   : > { %v4488_v51 = vpop.f32.mrf.mxu1  ;;  %v5643_v37 = vadd.f32 %v4532_v29, %v2838_v50 }
 0x277   : > { %v2842_v0 = vadd.f32 %v4488_v51, %v5555_v34  ;;  %v3027_v45 = vpop.f32.mrf.mxu0 }
 0x278   : > { %v2737_v52 = vpop.f32.mrf.mxu1  ;;  %v5646_v38 = vadd.f32 %v3027_v45, %v2836_v3 }
 0x279   : > { %v2840_v63 = vadd.f32 %v2737_v52, %v5558_v9  ;;  %v4533_v14 = vpop.f32.mrf.mxu0 }
 0x27a   : > { %v4489_v36 = vpop.f32.mrf.mxu1  ;;  %v5649_v48 = vadd.f32 %v4533_v14, %v2839_v13 }
 0x27b   : > { %v2843_v31 = vadd.f32 %v4489_v36, %v5561_v54  ;;  %v3030_v39 = vpop.f32.mrf.mxu0 }
 0x27c   : > { %v2740_v26 = vpop.f32.mrf.mxu1  ;;  %v5652_v7 = vadd.f32 %v3030_v39, %v2837_v17 }
 0x27d   : > { %v2841_v30 = vadd.f32 %v2740_v26, %v5564_v18  ;;  %v4536_v60 = vpop.f32.mrf.mxu0 }
 0x27e   : > { %v4492_v34 = vpop.f32.mrf.mxu1  ;;  %v5655_v19 = vadd.f32 %v4536_v60, %v2842_v0 }
 0x27f   : > { %v2846_v32 = vadd.f32 %v4492_v34, %v5567_v42  ;;  %v3043_v27 = vpop.f32.mrf.mxu0 }
 0x280   : > { %v2753_v9 = vpop.f32.mrf.mxu1  ;;  %v5658_v49 = vadd.f32 %v3043_v27, %v2840_v63 }
 0x281   : > { %v2844_v25 = vadd.f32 %v2753_v9, %v5570_v11  ;;  %v4537_v35 = vpop.f32.mrf.mxu0 }
 0x282   : > { %v4493_v54 = vpop.f32.mrf.mxu1  ;;  %v5661_v41 = vadd.f32 %v4537_v35, %v2843_v31 }
 0x283   : > { %v2847_v4 = vadd.f32 %v4493_v54, %v5573_v23  ;;  %v3046_v50 = vpop.f32.mrf.mxu0 }
 0x284   : > { %v2756_v18 = vpop.f32.mrf.mxu1  ;;  %v5664_v47 = vadd.f32 %v3046_v50, %v2841_v30 }
 0x285   : > { %v2845_v3 = vadd.f32 %v2756_v18, %v5576_v10  ;;  %v4540_v22 = vpop.f32.mrf.mxu0 }
 0x286   : > { %v5667_v42 = vpop.f32.mrf.mxu1  ;;  %v5669_v2 = vadd.f32 %v4540_v22, %v2846_v32 }
 0x287   : > { %v3059_v13 = vpop.f32.mrf.mxu0 }
 0x288   : > { %v5671_v15 = vpop.f32.mrf.mxu1  ;;  %v5673_v11 = vadd.f32 %v3059_v13, %v2844_v25 }
 0x289   : > { %v4541_v17 = vpop.f32.mrf.mxu0 }
 0x28a   : > { %v5675_v29 = vpop.f32.mrf.mxu1  ;;  %v5677_v23 = vadd.f32 %v4541_v17, %v2847_v4 }
 0x28b   : > { %v3062_v51 = vpop.f32.mrf.mxu0 }
 0x28c   : > { %v5679_v0 = vpop.f32.mrf.mxu1  ;;  %v5681_v45 = vadd.f32 %v3062_v51, %v2845_v3 }
 0x28d   : > { %v5683_v10 = vpop.f32.mrf.mxu0 }
 0x28e   : > { %v4500_v52 = vpop.f32.mrf.mxu1 }
 0x28f   : > { %v2854_v63 = vadd.f32 %v4500_v52, %v5591_v33  ;;  %v5686_v14 = vpop.f32.mrf.mxu0 }
 0x290   : > { %v5688_v36 = vpop.f32.mrf.mxu1 }
 0x291   : > { %v5690_v31 = vpop.f32.mrf.mxu0 }
 0x292   : > { %v4501_v39 = vpop.f32.mrf.mxu1 }
 0x293   : > { %v2855_v26 = vadd.f32 %v4501_v39, %v5597_v8  ;;  %v5693_v30 = vpop.f32.mrf.mxu0 }
 0x294   : > { %v5695_v60 = vpop.f32.mrf.mxu1 }
 0x295   : > { %v4548_v34 = vpop.f32.mrf.mxu0 }
 0x296   : > { %v4504_v32 = vpop.f32.mrf.mxu1  ;;  %v5697_v27 = vadd.f32 %v4548_v34, %v2854_v63 }
 0x297   : > { %v2858_v9 = vadd.f32 %v4504_v32, %v5603_v61  ;;  %v5700_v33 = vpop.f32.mrf.mxu0 }
 0x298   : > { %v2801_v25 = vpop.f32.mrf.mxu1 }
 0x299   : > { %v5703_v35 = vadd.f32 %v2801_v25, %v5606_v58  ;;  %v4549_v54 = vpop.f32.mrf.mxu0 }
 0x29a   : > { %v4505_v4 = vpop.f32.mrf.mxu1  ;;  %v5705_v50 = vadd.f32 %v4549_v54, %v2855_v26 }
 0x29b   : > { %v2859_v8 = vadd.f32 %v4505_v4, %v5609_v53  ;;  %v5708_v18 = vpop.f32.mrf.mxu0 }
 0x29c   : > { %v2804_v3 = vpop.f32.mrf.mxu1 }
 0x29d   : > { %v5711_v22 = vadd.f32 %v2804_v3, %v5612_v44  ;;  %v4552_v13 = vpop.f32.mrf.mxu0 }
 0x29e   : > { %v4508_v61 = vpop.f32.mrf.mxu1  ;;  %v5713_v17 = vadd.f32 %v4552_v13, %v2858_v9 }
 0x29f   : > { %v2862_v51 = vadd.f32 %v4508_v61, %v5615_v46  ;;  %v5716_v58 = vpop.f32.mrf.mxu0 }
 0x2a0   : > { %v2817_v52 = vpop.f32.mrf.mxu1 }
 0x2a1   : > { %v2860_v63 = vadd.f32 %v2817_v52, %v5618_v21  ;;  %v4553_v39 = vpop.f32.mrf.mxu0 }
 0x2a2   : > { %v4509_v26 = vpop.f32.mrf.mxu1  ;;  %v5719_v53 = vadd.f32 %v4553_v39, %v2859_v8 }
 0x2a3   : > { %v2863_v34 = vadd.f32 %v4509_v26, %v5623_v57  ;;  %v5722_v32 = vpop.f32.mrf.mxu0 }
 0x2a4   : > { %v2820_v44 = vpop.f32.mrf.mxu1 }
 0x2a5   : > { %v2861_v25 = vadd.f32 %v2820_v44, %v5626_v16  ;;  %v4556_v9 = vpop.f32.mrf.mxu0  ;;  %v3138_v16 = vadd.f32 %v5634_v20, %v5621_v1 }
 0x2a6   : > { %v4580_v54 = vpop.f32.mrf.mxu1  ;;  %v5725_v4 = vadd.f32 %v4556_v9, %v2862_v51 }
 0x2a7   : > { %v3123_v46 = vpop.f32.mrf.mxu0 }
 0x2a8   : > { %5818 = vst [vmem:[#allocation4_spill] sm:$0xff] %v5725_v4  ;;  %v3333_v3 = vpop.f32.mrf.mxu1  ;;  %v5727_v13 = vadd.f32 %v3123_v46, %v2860_v63 }
 0x2a9   : > { %v4557_v21 = vpop.f32.mrf.mxu0 }
 0x2aa   : > { %v4581_v61 = vpop.f32.mrf.mxu1  ;;  %v5729_v52 = vadd.f32 %v4557_v21, %v2863_v34  ;;  %v3139_v34 = vadd.f32 %v5640_v5, %v5629_v59 }
 0x2ab   : > { %v3126_v8 = vpop.f32.mrf.mxu0 }
 0x2ac   : > { %5819 = vst [vmem:[#allocation5_spill] sm:$0xff] %v5729_v52  ;;  %v3336_v39 = vpop.f32.mrf.mxu1  ;;  %v5731_v57 = vadd.f32 %v3126_v8, %v2861_v25 }
 0x2ad   : > { %v4576_v26 = vpop.f32.mrf.mxu0 }
 0x2ae   : > { %5820 = vst [vmem:[#allocation6_spill] sm:$0xff] %v5731_v57  ;;  %v5733_v40 = vpop.f32.mrf.mxu1  ;;  %v3446_v1 = vadd.f32 %v4576_v26, %v5631_v12  ;;  %v3448_v12 = vadd.f32 %v3333_v3, %v5646_v38  ;;  %v3450_v38 = vadd.f32 %v4580_v54, %v5643_v37 }
 0x2af   : > { %v3317_v51 = vpop.f32.mrf.mxu0 }
 0x2b0   : > { %v3349_v44 = vpop.f32.mrf.mxu1  ;;  %v3444_v9 = vadd.f32 %v3317_v51, %v3138_v16  ;;  %v2848_v51 = vadd.f32 %v5671_v15, %v5582_v6  ;;  %v2850_v6 = vadd.f32 %v5667_v42, %v5579_v24  ;;  %v2852_v24 = vadd.f32 %v5688_v36, %v5594_v62 }
 0x2b1   : > { %v4577_v4 = vpop.f32.mrf.mxu0  ;;  %v3452_v37 = vadd.f32 %v3349_v44, %v5658_v49 }
 0x2b2   : > { %v5737_v63 = vpop.f32.mrf.mxu1  ;;  %3476 = vxpose.xlu1.b32.start [1/16] (narrow) %v3444_v9, 8  ;;  %v3447_v59 = vadd.f32 %v4577_v4, %v5637_v56  ;;  %v3154_v9 = vadd.f32 %v5686_v14, %v2848_v51  ;;  %v3449_v56 = vadd.f32 %v3336_v39, %v5652_v7  ;;  %v3156_v4 = vadd.f32 %v5683_v10, %v2850_v6 }
 0x2b3   : > { %v3320_v46 = vpop.f32.mrf.mxu0  ;;  %v3451_v7 = vadd.f32 %v4581_v61, %v5649_v48  ;;  %v3158_v39 = vadd.f32 %v5700_v33, %v2852_v24  ;;  %v3454_v33 = vadd.f32 %v5733_v40, %v5655_v19  ;;  %v3455_v49 = vadd.f32 %v5737_v63, %v5661_v41 }
 0x2b4   : > { %v3352_v21 = vpop.f32.mrf.mxu1  ;;  %v3445_v25 = vadd.f32 %v3320_v46, %v3139_v34  ;;  %v2849_v46 = vadd.f32 %v5679_v0, %v5588_v43  ;;  %v2851_v43 = vadd.f32 %v5675_v29, %v5585_v55  ;;  %v2853_v55 = vadd.f32 %v5695_v60, %v5600_v28 }
 0x2b5   : > { %v3453_v62 = vadd.f32 %v3352_v21, %v5664_v47  ;;  %v3162_v47 = vadd.f32 %v5716_v58, %v5703_v35  ;;  %v5821_v21 = vld [vmem:[#allocation6_spill] sm:$0xff] }
 0x2b6   : > { %v5741_v8 = vpop.f32.mrf.mxu1  ;;  %3477 = vxpose.xlu1.b32.cont [2/16] (narrow) %v3445_v25, 8  ;;  %v3157_v3 = vadd.f32 %v5690_v31, %v2851_v43  ;;  %v3159_v54 = vadd.f32 %v5708_v18, %v2853_v55 }
 0x2b7   : > { %v3458_v35 = vadd.f32 %v5741_v8, %v5669_v2  ;;  %v5822_v2 = vld [vmem:[#allocation4_spill] sm:$0xff]  ;;  %v5823_v8 = vld [vmem:[#allocation5_spill] sm:$0xff] }
 0x2b8   : > { %v5743_v52 = vpop.f32.mrf.mxu1 }
 0x2ba   : > { %v5746_v20 = vpop.f32.mrf.mxu1  ;;  %3478 = vxpose.xlu1.b32.cont [3/16] (narrow) %v3446_v1, 8  ;;  %v3155_v1 = vadd.f32 %v5693_v30, %v2849_v46 }
 0x2bc   : > { %v5748_v16 = vpop.f32.mrf.mxu1 }
 0x2bd   : > { %v3457_v41 = vadd.f32 %v5748_v16, %v5681_v45 }
 0x2be   : > { %v4592_v5 = vpop.f32.mrf.mxu1  ;;  %3479 = vxpose.xlu1.b32.cont [4/16] (narrow) %v3447_v59, 8  ;;  %v309_v59 = vpop.xlane.xlu0 %308 }
 0x2bf   : > { %v3462_v0 = vadd.f32 %v4592_v5, %v3156_v4 }
 0x2c0   : > { %v3381_v34 = vpop.f32.mrf.mxu1 }
 0x2c1   : > { %v3460_v26 = vadd.f32 %v3381_v34, %v3154_v9 }
 0x2c2   : > { %v4593_v25 = vpop.f32.mrf.mxu1  ;;  %3480 = vxpose.xlu1.b32.cont [5/16] (narrow) %v3448_v12, 8 }
 0x2c3   : > { %3508 = vxpose.xlu0.b32.start [1/16] (narrow) %v3460_v26, 8  ;;  %v3463_v42 = vadd.f32 %v4593_v25, %v3157_v3  ;;  %v3561_v26 = vlaneseq }
 0x2c4   : > { %v3384_v57 = vpop.f32.mrf.mxu1 }
 0x2c5   : > { %v3461_v15 = vadd.f32 %v3384_v57, %v3155_v1  ;;  %v3456_v57 = vadd.f32 %v5743_v52, %v5673_v11  ;;  %v3562_v6 = vshrl.u32 %v3561_v26, 7 }
 0x2c6   : > { %v4596_v14 = vpop.f32.mrf.mxu1  ;;  %3481 = vxpose.xlu1.b32.cont [6/16] (narrow) %v3449_v56, 8 }
 0x2c7   : > { %3509 = vxpose.xlu0.b32.cont [2/16] (narrow) %v3461_v15, 8  ;;  %v3466_v61 = vadd.f32 %v4596_v14, %v5697_v27  ;;  %v3163_v27 = vadd.f32 %v5722_v32, %v5711_v22  ;;  %v3459_v22 = vadd.f32 %v5746_v20, %v5677_v23  ;;  %v319_v23 = vmul.f32 0.00390625, %v309_v59  ;;  %v318_v20 = vpop.xlane.xlu0 %317 }
 0x2c8   : > { %v3397_v30 = vpop.f32.mrf.mxu1  ;;  %v320_v5 = vmul.f32 0.00390625, %v318_v20 }
 0x2c9   : > { %v3464_v29 = vadd.f32 %v3397_v30, %v3158_v39  ;;  %v5824_v39 = vld [vmem:[#allocation3_spill] sm:$0xff] }
 0x2ca   : > { %3482 = vxpose.xlu1.b32.cont [7/16] (narrow) %v3450_v38, 8  ;;  %v4597_v10 = vpop.f32.mrf.mxu1 }
 0x2cb   : > { %3510 = vxpose.xlu0.b32.cont [3/16] (narrow) %v3462_v0, 8  ;;  %v3467_v60 = vadd.f32 %v4597_v10, %v5705_v50  ;;  %v3544_v46 = vpop.permute.xlu0 %3543 }
 0x2cc   : > { %v3400_v31 = vpop.f32.mrf.mxu1 }
 0x2cd   : > { %v3465_v48 = vadd.f32 %v3400_v31, %v3159_v54 }
 0x2ce   : > { %3483 = vxpose.xlu1.b32.cont [8/16] (narrow) %v3451_v7, 8  ;;  %v4600_v36 = vpop.f32.mrf.mxu1 }
 0x2cf   : > { %3511 = vxpose.xlu0.b32.cont [4/16] (narrow) %v3463_v42, 8  ;;  %v3470_v58 = vadd.f32 %v4600_v36, %v5713_v17  ;;  %v3552_v56 = vpop.permute.xlu0 %3551 }
 0x2d0   : > { %v3413_v28 = vpop.f32.mrf.mxu1  ;;  %v3553_v30 = vrot.slane %v3552_v56, 4 }
 0x2d1   : > { %v3468_v40 = vadd.f32 %v3413_v28, %v3162_v47 }
 0x2d2   : > { %3484 = vxpose.xlu1.b32.cont [9/16] (narrow) %v3452_v37, 8  ;;  %v4601_v18 = vpop.f32.mrf.mxu1 }
 0x2d3   : > { %3512 = vxpose.xlu0.b32.cont [5/16] (narrow) %v3464_v29, 8  ;;  %v3471_v32 = vadd.f32 %v4601_v18, %v5719_v53  ;;  %v321_v53 = vmul.f32 %v319_v23, %v319_v23 }
 0x2d4   : > { %v3416_v19 = vpop.f32.mrf.mxu1 }
 0x2d5   : > { %v3469_v50 = vadd.f32 %v3416_v19, %v3163_v27  ;;  %v322_v9 = vsub.f32 %v320_v5, %v321_v53 }
 0x2d6   : > { %3485 = vxpose.xlu1.b32.cont [10/16] (narrow) %v3453_v62, 8  ;;  %v4604_v44 = vpop.f32.mrf.mxu1 }
 0x2d7   : > { %3513 = vxpose.xlu0.b32.cont [6/16] (narrow) %v3465_v48, 8  ;;  %v3474_v17 = vadd.f32 %v4604_v44, %v5822_v2  ;;  %v323_v34 = vadd.f32 1e-05, %v322_v9 }
 0x2d8   : > { %v3429_v11 = vpop.f32.mrf.mxu1 }
 0x2d9   : > { %v3472_v45 = vadd.f32 %v3429_v11, %v5727_v13  ;;  %v4740_v13 = vmov 839922192   ;;  %4727 = vrsqrt.f32 %v323_v34 }
 0x2da   : > { %3486 = vxpose.xlu1.b32.cont [11/16] (narrow) %v3454_v33, 8  ;;  %v4605_v52 = vpop.f32.mrf.mxu1  ;;  %v3559_v12 = vunpack.c.l.s4 %v4740_v13 }
 0x2db   : > { %3514 = vxpose.xlu0.b32.cont [7/16] (narrow) %v3466_v61, 8  ;;  %v3475_v51 = vadd.f32 %v4605_v52, %v5823_v8 }
 0x2dc   : > { %v3432_v63 = vpop.f32.mrf.mxu1  ;;  %v3560_v1 = vunpack.c.0.s8 %v3559_v12 }
 0x2dd   : > { %v3473_v16 = vadd.f32 %v3432_v63, %v5821_v21 }
 0x2de   : > { %3487 = vxpose.xlu1.b32.cont [12/16] (narrow) %v3455_v49, 8  ;;  %v3563_v14 = vsub.s32 %v3560_v1, %v3562_v6 }
 0x2df   : > { %3515 = vxpose.xlu0.b32.cont [8/16] (narrow) %v3467_v60, 8 }
 0x2e0   : > { %v3564_v0 = vrot.slane %v319_v23, %v3563_v14 }
 0x2e2   : > { %3488 = vxpose.xlu1.b32.cont [13/16] (narrow) %v3456_v57, 8  ;;  %v3566_v55 = vsub.f32 %v5824_v39, %v3564_v0 }
 0x2e3   : > { %3516 = vxpose.xlu0.b32.cont [9/16] (narrow) %v3468_v40, 8 }
 0x2e6   : > { %3489 = vxpose.xlu1.b32.cont [14/16] (narrow) %v3457_v41, 8  ;;  %v4728_v24 = vpop.eup %4727 }
 0x2e7   : > { %3517 = vxpose.xlu0.b32.cont [10/16] (narrow) %v3469_v50, 8 }
 0x2ea   : > { %3490 = vxpose.xlu1.b32.cont [15/16] (narrow) %v3458_v35, 8 }
 0x2eb   : > { %3518 = vxpose.xlu0.b32.cont [11/16] (narrow) %v3470_v58, 8 }
 0x2ee   : > { %3491 = vxpose.xlu1.b32.end [16/16] (narrow) %v3459_v22, 8 }
 0x2ef   : > { %3519 = vxpose.xlu0.b32.cont [12/16] (narrow) %v3471_v32, 8 }
 0x2f3   : > { %3520 = vxpose.xlu0.b32.cont [13/16] (narrow) %v3472_v45, 8 }
 0x2f7   : > { %3521 = vxpose.xlu0.b32.cont [14/16] (narrow) %v3473_v16, 8 }
 0x2fb   : > { %3522 = vxpose.xlu0.b32.cont [15/16] (narrow) %v3474_v17, 8 }
 0x2ff   : > { %3523 = vxpose.xlu0.b32.end [16/16] (narrow) %v3475_v51, 8 }
 0x32e   : > { %v3492_v25 = vpop.trf.xlu1 }
 0x32f   : > { %v3546_v15 = vadd.f32 %v3544_v46, %v3492_v25  ;;  %v3555_v37 = vadd.f32 %v3553_v30, %v3492_v25 }
 0x331   : > { %v3567_v43 = vadd.f32 1.0, %v3546_v15 }
 0x333   : > { %v3569_v7 = vmul.f32 %v4728_v24, %v3567_v43 }
 0x33f   : > { %v3524_v4 = vpop.trf.xlu0 }
 0x340   : > { %v3547_v38 = vadd.f32 %v3544_v46, %v3524_v4  ;;  %v3556_v42 = vadd.f32 %v3553_v30, %v3524_v4 }
 0x342   : > { %v3568_v3 = vadd.f32 1.0, %v3547_v38  ;;  %v3578_v54 = vcombine.high %v3555_v37, %v3556_v42 }
 0x344   : > { %v3570_v10 = vmul.f32 %v4728_v24, %v3568_v3 }
 0x346   : > { %v3573_v29 = vcombine.low %v3569_v7, %v3570_v10 }
 0x348   : > { %v3575_v31 = vmul.f32 %v3573_v29, %v3566_v55 }
 0x34a   : > { %v3580_v62 = vadd.f32 %v3578_v54, %v3575_v31 }
 0x34c   : > { %3581 = vst [vmem:[%s298_s22] sm:$0xff] %v3580_v62 }
 0x34d PF: > { %s17_s24 = sadd.s32 1, %s4736_s24  }
 0x34e   : > { %p14_p4 = scmp.ge.s32.totalorder %s17_s24, 4  }
 0x350   :  { %16 = sbr.rel (!%p14_p4) target bundleno = 1 (0x1), region = 92 }

</bundles_post_ra>
